<compile_context>
chip_gen: v7x
topology: tpu7x:2x2x1
jax: 0.10.0
libtpu: 0.0.40
codegen_flags: <defaults>
</compile_context>

<pallas_src>
import jax
import jax.numpy as jnp
from jax import lax
from jax.experimental import pallas as pl
from jax.experimental.pallas import tpu as pltpu

# ----------------------------- scaled config --------------------------------
BATCH = 2
C_IN = 3
IMG = 32
PATCH = 16
GRID_HW = IMG // PATCH                 # 2
N_PATCH = GRID_HW * GRID_HW            # 4
SEQ = N_PATCH + 1                      # 5 (CLS + patches)
HIDDEN = 32                            # stands in for 768
HEADS = 4
HEAD_DIM = HIDDEN // HEADS             # 8
INTERMEDIATE = 4 * HIDDEN              # 128
PROJ_DIM = 16                          # stands in for 512
NUM_CLASSES = 10                       # stands in for 1000
CLS_PAD = 128                          # lane-dense padded classifier width
NUM_LAYERS = 2                         # stands in for 12
PATCH_DIM = C_IN * PATCH * PATCH       # 768
LN_EPS = 1e-5
ATTN_SCALE = HEAD_DIM ** -0.5


# ------------------------------- kernel --------------------------------------
def _layernorm(x, g, b):
    mu = jnp.mean(x, axis=-1, keepdims=True)
    var = jnp.mean((x - mu) ** 2, axis=-1, keepdims=True)
    return (x - mu) * lax.rsqrt(var + LN_EPS) * g + b


def clip_lp_kernel(
    patches_ref,                          # (1, N_PATCH, PATCH_DIM)
    wp_ref, cls_ref, pos_ref,             # patch-embed weight / CLS / position
    pre_g_ref, pre_b_ref,                 # pre-LayerNorm
    ln1g_ref, ln1b_ref,                   # (L, 1, H)
    wq_ref, bq_ref, wk_ref, bk_ref,       # (L*HEADS, H, Dh) / (L*HEADS, 1, Dh)
    wv_ref, bv_ref,
    wo_ref, bo_ref,                       # (L*HEADS, Dh, H) / (L, 1, H)
    ln2g_ref, ln2b_ref,                   # (L, 1, H)
    w1_ref, b1_ref,                       # (L, H, I) / (L, 1, I)
    w2_ref, b2_ref,                       # (L, I, H) / (L, 1, H)
    post_g_ref, post_b_ref,               # post-LayerNorm
    wproj_ref,                            # (H, P)  visual_projection (no bias)
    wcls_ref, bcls_ref,                   # (P, CLS_PAD) / (1, CLS_PAD)  linear probe
    out_ref,                              # (1, 1, CLS_PAD)
    x_scratch,                            # VMEM (SEQ, H)
):
    # ---- embeddings: conv-as-matmul; CLS/patch rows written directly (no concat) ----
    pe = jnp.dot(patches_ref[0], wp_ref[...],
                 preferred_element_type=jnp.float32)                     # (N, H)
    x_scratch[0:1, :] = cls_ref[...]
    x_scratch[1:SEQ, :] = pe
    x = _layernorm(x_scratch[...] + pos_ref[...],
                   pre_g_ref[...], pre_b_ref[...])                       # pre_layrnorm

    # ---- encoder: fori_loop over layer-stacked weights, activation stays on-chip ----
    def layer_body(l, x):
        base = l * HEADS
        h = _layernorm(x, ln1g_ref[l], ln1b_ref[l])
        acc = jnp.zeros((SEQ, HIDDEN), jnp.float32)
        for i in range(HEADS):                     # static unroll; head-major weights
            hi = base + i
            qh = (jnp.dot(h, wq_ref[hi], preferred_element_type=jnp.float32)
                  + bq_ref[hi]) * ATTN_SCALE                             # (S, Dh)
            kh = jnp.dot(h, wk_ref[hi], preferred_element_type=jnp.float32) + bk_ref[hi]
            vh = jnp.dot(h, wv_ref[hi], preferred_element_type=jnp.float32) + bv_ref[hi]
            # q @ k^T without a materialized transpose: contract last dims of both.
            s = lax.dot_general(qh, kh, (((1,), (1,)), ((), ())),
                                preferred_element_type=jnp.float32)      # (S, S)
            s = s - jnp.max(s, axis=-1, keepdims=True)
            e = jnp.exp(s)
            p = e * pl.reciprocal(jnp.sum(e, axis=-1, keepdims=True), approx=True)
            ctx = jnp.dot(p, vh, preferred_element_type=jnp.float32)     # (S, Dh)
            # fold the output projection per head -> no concatenate of heads
            acc = acc + jnp.dot(ctx, wo_ref[hi], preferred_element_type=jnp.float32)
        x = x + acc + bo_ref[l]                                          # residual 1
        h2 = _layernorm(x, ln2g_ref[l], ln2b_ref[l])
        f = jnp.dot(h2, w1_ref[l], preferred_element_type=jnp.float32) + b1_ref[l]
        f = f * jax.nn.sigmoid(1.702 * f)                                # quick_gelu
        f = jnp.dot(f, w2_ref[l], preferred_element_type=jnp.float32) + b2_ref[l]
        return x + f                                                     # residual 2

    x = lax.fori_loop(0, NUM_LAYERS, layer_body, x)

    # ---- head: pooled CLS -> post-LN -> projection -> linear probe (lane-padded) ----
    pooled = x[0:1, :]                                                   # CLS token only
    pn = _layernorm(pooled, post_g_ref[...], post_b_ref[...])
    emb = jnp.dot(pn, wproj_ref[...], preferred_element_type=jnp.float32)   # (1, P)
    out_ref[0] = (jnp.dot(emb, wcls_ref[...], preferred_element_type=jnp.float32)
                  + bcls_ref[...])                                       # (1, 128)


# ------------------------------ pallas wrapper --------------------------------
def _full_spec(shape):
    n = len(shape)
    return pl.BlockSpec(shape, lambda b, _n=n: (0,) * _n)


def _batched_spec(shape):
    n = len(shape)
    return pl.BlockSpec((1,) + tuple(shape[1:]),
                        lambda b, _n=n: (b,) + (0,) * (_n - 1))


def _pack_params(p):
    """Stack per-layer weights on leading axes; reshape attention weights head-major."""
    L = NUM_LAYERS
    layers = p["layers"]
    st = lambda name: jnp.stack([lp[name] for lp in layers], axis=0)

    def qkv_hm(name):      # (L,H,H) per-head columns -> (L*HEADS, H, Dh)
        w = st(name).reshape(L, HIDDEN, HEADS, HEAD_DIM)
        return w.transpose(0, 2, 1, 3).reshape(L * HEADS, HIDDEN, HEAD_DIM)

    def qkv_b_hm(name):    # (L,1,H) -> (L*HEADS, 1, Dh)
        return st(name).reshape(L * HEADS, 1, HEAD_DIM)

    def out_hm(name):      # (L,H,H) per-head rows -> (L*HEADS, Dh, H)
        return st(name).reshape(L * HEADS, HEAD_DIM, HIDDEN)

    pad = CLS_PAD - NUM_CLASSES
    return (
        p["w_patch"], p["cls"], p["pos"], p["pre_ln_g"], p["pre_ln_b"],
        st("ln1_g"), st("ln1_b"),
        qkv_hm("wq"), qkv_b_hm("bq"),
        qkv_hm("wk"), qkv_b_hm("bk"),
        qkv_hm("wv"), qkv_b_hm("bv"),
        out_hm("wo"), st("bo"),
        st("ln2_g"), st("ln2_b"),
        st("w1"), st("b1"), st("w2"), st("b2"),
        p["post_ln_g"], p["post_ln_b"], p["w_proj"],
        jnp.pad(p["w_cls"], ((0, 0), (0, pad))),   # zero-pad classes to 128 lanes
        jnp.pad(p["b_cls"], ((0, 0), (0, pad))),
    )


@jax.jit
def clip_lp_forward(x_nchw, params):
    # Glue: im2col of the strided patch conv (NCHW -> [B, N, C*P*P]); ordering matches
    # a flattened PyTorch conv weight [H, C, P, P].
    B = x_nchw.shape[0]
    pim = x_nchw.reshape(B, C_IN, GRID_HW, PATCH, GRID_HW, PATCH)
    pim = pim.transpose(0, 2, 4, 1, 3, 5).reshape(B, N_PATCH, PATCH_DIM)

    weights = _pack_params(params)
    out = pl.pallas_call(
        clip_lp_kernel,
        out_shape=jax.ShapeDtypeStruct((B, 1, CLS_PAD), jnp.float32),
        grid=(B,),
        in_specs=[_batched_spec(pim.shape)] + [_full_spec(w.shape) for w in weights],
        out_specs=_batched_spec((B, 1, CLS_PAD)),
        scratch_shapes=[pltpu.VMEM((SEQ, HIDDEN), jnp.float32)],
        compiler_params=pltpu.CompilerParams(
            dimension_semantics=("parallel",),     # batch shards across TCs (v7x)
        ),
    )(pim, *weights)
    return out[:, 0, :NUM_CLASSES]                                       # (B, classes)


# ------------------------------ params ----------------------------------------
def init_params(key):
    cnt = [0]

    def nrm(shape, scale=0.02):
        cnt[0] += 1
        return scale * jax.random.normal(jax.random.fold_in(key, cnt[0]),
                                         shape, jnp.float32)

    def ones(shape):
        return jnp.ones(shape, jnp.float32)

    def zeros(shape):
        return jnp.zeros(shape, jnp.float32)

    params = {
        "w_patch": nrm((PATCH_DIM, HIDDEN)),       # conv weight, flattened [C*P*P, H]
        "cls": nrm((1, HIDDEN)),
        "pos": nrm((SEQ, HIDDEN)),
        "pre_ln_g": ones((1, HIDDEN)), "pre_ln_b": zeros((1, HIDDEN)),
        "post_ln_g": ones((1, HIDDEN)), "post_ln_b": zeros((1, HIDDEN)),
        "w_proj": nrm((HIDDEN, PROJ_DIM)),         # visual_projection (no bias)
        "w_cls": nrm((PROJ_DIM, NUM_CLASSES)),     # linear probe
        "b_cls": zeros((1, NUM_CLASSES)),
        "layers": [],
    }
    for _ in range(NUM_LAYERS):
        params["layers"].append({
            "ln1_g": ones((1, HIDDEN)), "ln1_b": zeros((1, HIDDEN)),
            "wq": nrm((HIDDEN, HIDDEN)), "bq": zeros((1, HIDDEN)),
            "wk": nrm((HIDDEN, HIDDEN)), "bk": zeros((1, HIDDEN)),
            "wv": nrm((HIDDEN, HIDDEN)), "bv": zeros((1, HIDDEN)),
            "wo": nrm((HIDDEN, HIDDEN)), "bo": zeros((1, HIDDEN)),
            "ln2_g": ones((1, HIDDEN)), "ln2_b": zeros((1, HIDDEN)),
            "w1": nrm((HIDDEN, INTERMEDIATE)), "b1": zeros((1, INTERMEDIATE)),
            "w2": nrm((INTERMEDIATE, HIDDEN)), "b2": zeros((1, HIDDEN)),
        })
    return params


# ---------------------------------- main ---------------------------------------
if __name__ == "__main__":
    key = jax.random.PRNGKey(0)
    params = init_params(jax.random.fold_in(key, 1))
    x = jax.random.normal(jax.random.fold_in(key, 2),
                          (BATCH, C_IN, IMG, IMG), jnp.float32)
    out = clip_lp_forward(x, params)
    jax.block_until_ready(out)
    assert out.shape == (BATCH, NUM_CLASSES), out.shape
    assert bool(jnp.all(jnp.isfinite(out)))
    print("KERNEL_OK")
</pallas_src>

<mosaic_0001>
module attributes {stable_mosaic.version = 11 : i64} {
  func.func @clip_lp_kernel(%arg0: i32, %arg1: memref<1x4x768xf32, #tpu.memory_space<vmem>>, %arg2: memref<768x32xf32, #tpu.memory_space<vmem>>, %arg3: memref<1x32xf32, #tpu.memory_space<vmem>>, %arg4: memref<5x32xf32, #tpu.memory_space<vmem>>, %arg5: memref<1x32xf32, #tpu.memory_space<vmem>>, %arg6: memref<1x32xf32, #tpu.memory_space<vmem>>, %arg7: memref<2x1x32xf32, #tpu.memory_space<vmem>>, %arg8: memref<2x1x32xf32, #tpu.memory_space<vmem>>, %arg9: memref<8x32x8xf32, #tpu.memory_space<vmem>>, %arg10: memref<8x1x8xf32, #tpu.memory_space<vmem>>, %arg11: memref<8x32x8xf32, #tpu.memory_space<vmem>>, %arg12: memref<8x1x8xf32, #tpu.memory_space<vmem>>, %arg13: memref<8x32x8xf32, #tpu.memory_space<vmem>>, %arg14: memref<8x1x8xf32, #tpu.memory_space<vmem>>, %arg15: memref<8x8x32xf32, #tpu.memory_space<vmem>>, %arg16: memref<2x1x32xf32, #tpu.memory_space<vmem>>, %arg17: memref<2x1x32xf32, #tpu.memory_space<vmem>>, %arg18: memref<2x1x32xf32, #tpu.memory_space<vmem>>, %arg19: memref<2x32x128xf32, #tpu.memory_space<vmem>>, %arg20: memref<2x1x128xf32, #tpu.memory_space<vmem>>, %arg21: memref<2x128x32xf32, #tpu.memory_space<vmem>>, %arg22: memref<2x1x32xf32, #tpu.memory_space<vmem>>, %arg23: memref<1x32xf32, #tpu.memory_space<vmem>>, %arg24: memref<1x32xf32, #tpu.memory_space<vmem>>, %arg25: memref<32x16xf32, #tpu.memory_space<vmem>>, %arg26: memref<16x128xf32, #tpu.memory_space<vmem>>, %arg27: memref<1x128xf32, #tpu.memory_space<vmem>>, %arg28: memref<1x1x128xf32, #tpu.memory_space<vmem>>, %arg29: memref<5x32xf32, #tpu.memory_space<vmem>>) attributes {dimension_semantics = [#tpu.dimension_semantics<parallel>], iteration_bounds = array<i64: 2>, scalar_prefetch = 0 : i64, scratch_operands = 1 : i64, tpu.core_type = #tpu.core_type<tc>, window_params = [{transform_indices = @transform_0, window_bounds = array<i64: 1, 4, 768>}, {pipeline_mode = #tpu.pipeline_mode<synchronous>, transform_indices = @transform_1, window_bounds = array<i64: 768, 32>}, {pipeline_mode = #tpu.pipeline_mode<synchronous>, transform_indices = @transform_2, window_bounds = array<i64: 1, 32>}, {pipeline_mode = #tpu.pipeline_mode<synchronous>, transform_indices = @transform_3, window_bounds = array<i64: 5, 32>}, {pipeline_mode = #tpu.pipeline_mode<synchronous>, transform_indices = @transform_4, window_bounds = array<i64: 1, 32>}, {pipeline_mode = #tpu.pipeline_mode<synchronous>, transform_indices = @transform_5, window_bounds = array<i64: 1, 32>}, {pipeline_mode = #tpu.pipeline_mode<synchronous>, transform_indices = @transform_6, window_bounds = array<i64: 2, 1, 32>}, {pipeline_mode = #tpu.pipeline_mode<synchronous>, transform_indices = @transform_7, window_bounds = array<i64: 2, 1, 32>}, {pipeline_mode = #tpu.pipeline_mode<synchronous>, transform_indices = @transform_8, window_bounds = array<i64: 8, 32, 8>}, {pipeline_mode = #tpu.pipeline_mode<synchronous>, transform_indices = @transform_9, window_bounds = array<i64: 8, 1, 8>}, {pipeline_mode = #tpu.pipeline_mode<synchronous>, transform_indices = @transform_10, window_bounds = array<i64: 8, 32, 8>}, {pipeline_mode = #tpu.pipeline_mode<synchronous>, transform_indices = @transform_11, window_bounds = array<i64: 8, 1, 8>}, {pipeline_mode = #tpu.pipeline_mode<synchronous>, transform_indices = @transform_12, window_bounds = array<i64: 8, 32, 8>}, {pipeline_mode = #tpu.pipeline_mode<synchronous>, transform_indices = @transform_13, window_bounds = array<i64: 8, 1, 8>}, {pipeline_mode = #tpu.pipeline_mode<synchronous>, transform_indices = @transform_14, window_bounds = array<i64: 8, 8, 32>}, {pipeline_mode = #tpu.pipeline_mode<synchronous>, transform_indices = @transform_15, window_bounds = array<i64: 2, 1, 32>}, {pipeline_mode = #tpu.pipeline_mode<synchronous>, transform_indices = @transform_16, window_bounds = array<i64: 2, 1, 32>}, {pipeline_mode = #tpu.pipeline_mode<synchronous>, transform_indices = @transform_17, window_bounds = array<i64: 2, 1, 32>}, {pipeline_mode = #tpu.pipeline_mode<synchronous>, transform_indices = @transform_18, window_bounds = array<i64: 2, 32, 128>}, {pipeline_mode = #tpu.pipeline_mode<synchronous>, transform_indices = @transform_19, window_bounds = array<i64: 2, 1, 128>}, {pipeline_mode = #tpu.pipeline_mode<synchronous>, transform_indices = @transform_20, window_bounds = array<i64: 2, 128, 32>}, {pipeline_mode = #tpu.pipeline_mode<synchronous>, transform_indices = @transform_21, window_bounds = array<i64: 2, 1, 32>}, {pipeline_mode = #tpu.pipeline_mode<synchronous>, transform_indices = @transform_22, window_bounds = array<i64: 1, 32>}, {pipeline_mode = #tpu.pipeline_mode<synchronous>, transform_indices = @transform_23, window_bounds = array<i64: 1, 32>}, {pipeline_mode = #tpu.pipeline_mode<synchronous>, transform_indices = @transform_24, window_bounds = array<i64: 32, 16>}, {pipeline_mode = #tpu.pipeline_mode<synchronous>, transform_indices = @transform_25, window_bounds = array<i64: 16, 128>}, {pipeline_mode = #tpu.pipeline_mode<synchronous>, transform_indices = @transform_26, window_bounds = array<i64: 1, 128>}, {transform_indices = @transform_27, window_bounds = array<i64: 1, 1, 128>}]} {
    %c0 = arith.constant 0 : index
    %c0_0 = arith.constant 0 : index
    %c0_1 = arith.constant 0 : index
    %0 = vector.load %arg1[%c0, %c0_0, %c0_1] : memref<1x4x768xf32, #tpu.memory_space<vmem>>, vector<1x4x768xf32>
    %1 = vector.shape_cast %0 : vector<1x4x768xf32> to vector<4x768xf32>
    %c0_2 = arith.constant 0 : index
    %c0_3 = arith.constant 0 : index
    %2 = vector.load %arg2[%c0_2, %c0_3] : memref<768x32xf32, #tpu.memory_space<vmem>>, vector<768x32xf32>
    %cst = arith.constant dense<0.000000e+00> : vector<4x32xf32>
    %3 = tpu.matmul %1, %2, %cst {dimension_numbers = #tpu.dot_dimension_numbers<[1], [0], [0], [1], [0, 0, 1, 1], [], []>} : vector<4x768xf32>, vector<768x32xf32>, vector<4x32xf32> -> vector<4x32xf32>
    %c0_4 = arith.constant 0 : index
    %c0_5 = arith.constant 0 : index
    %4 = vector.load %arg3[%c0_4, %c0_5] : memref<1x32xf32, #tpu.memory_space<vmem>>, vector<1x32xf32>
    %c0_6 = arith.constant 0 : index
    %c0_7 = arith.constant 0 : index
    %5 = vector.load %arg29[%c0_6, %c0_7] : memref<5x32xf32, #tpu.memory_space<vmem>>, vector<1x32xf32>
    tpu.vector_store %arg29[%c0_6, %c0_7], %4 {strides = array<i32>} : memref<5x32xf32, #tpu.memory_space<vmem>>, vector<1x32xf32>,
    %c1 = arith.constant 1 : index
    %c0_8 = arith.constant 0 : index
    %6 = vector.load %arg29[%c1, %c0_8] : memref<5x32xf32, #tpu.memory_space<vmem>>, vector<4x32xf32>
    tpu.vector_store %arg29[%c1, %c0_8], %3 {strides = array<i32>} : memref<5x32xf32, #tpu.memory_space<vmem>>, vector<4x32xf32>,
    %c0_9 = arith.constant 0 : index
    %c0_10 = arith.constant 0 : index
    %7 = vector.load %arg29[%c0_9, %c0_10] : memref<5x32xf32, #tpu.memory_space<vmem>>, vector<5x32xf32>
    %c0_11 = arith.constant 0 : index
    %c0_12 = arith.constant 0 : index
    %8 = vector.load %arg4[%c0_11, %c0_12] : memref<5x32xf32, #tpu.memory_space<vmem>>, vector<5x32xf32>
    %9 = arith.addf %7, %8 : vector<5x32xf32>
    %c0_13 = arith.constant 0 : index
    %c0_14 = arith.constant 0 : index
    %10 = vector.load %arg5[%c0_13, %c0_14] : memref<1x32xf32, #tpu.memory_space<vmem>>, vector<1x32xf32>
    %c0_15 = arith.constant 0 : index
    %c0_16 = arith.constant 0 : index
    %11 = vector.load %arg6[%c0_15, %c0_16] : memref<1x32xf32, #tpu.memory_space<vmem>>, vector<1x32xf32>
    %cst_17 = arith.constant dense<0.000000e+00> : vector<5xf32>
    %12 = vector.multi_reduction <add>, %9, %cst_17 [1] : vector<5x32xf32> to vector<5xf32>
    %13 = vector.shape_cast %12 : vector<5xf32> to vector<5x1xf32>
    %cst_18 = arith.constant 3.200000e+01 : f32
    %14 = vector.broadcast %cst_18 : f32 to vector<5x1xf32>
    %15 = arith.divf %13, %14 : vector<5x1xf32>
    %16 = vector.broadcast %15 : vector<5x1xf32> to vector<5x32xf32>
    %17 = arith.subf %9, %16 : vector<5x32xf32>
    %18 = arith.mulf %17, %17 : vector<5x32xf32>
    %cst_19 = arith.constant dense<0.000000e+00> : vector<5xf32>
    %19 = vector.multi_reduction <add>, %18, %cst_19 [1] : vector<5x32xf32> to vector<5xf32>
    %20 = vector.shape_cast %19 : vector<5xf32> to vector<5x1xf32>
    %cst_20 = arith.constant 3.200000e+01 : f32
    %21 = vector.broadcast %cst_20 : f32 to vector<5x1xf32>
    %22 = arith.divf %20, %21 : vector<5x1xf32>
    %23 = vector.broadcast %15 : vector<5x1xf32> to vector<5x32xf32>
    %24 = arith.subf %9, %23 : vector<5x32xf32>
    %cst_21 = arith.constant 9.99999974E-6 : f32
    %25 = vector.broadcast %cst_21 : f32 to vector<5x1xf32>
    %26 = arith.addf %22, %25 : vector<5x1xf32>
    %27 = math.rsqrt %26 : vector<5x1xf32>
    %28 = vector.broadcast %27 : vector<5x1xf32> to vector<5x32xf32>
    %29 = arith.mulf %24, %28 : vector<5x32xf32>
    %30 = vector.broadcast %10 : vector<1x32xf32> to vector<5x32xf32>
    %31 = arith.mulf %29, %30 : vector<5x32xf32>
    %32 = vector.broadcast %11 : vector<1x32xf32> to vector<5x32xf32>
    %33 = arith.addf %31, %32 : vector<5x32xf32>
    %c0_i32 = arith.constant 0 : i32
    %c2_i32 = arith.constant 2 : i32
    %34 = arith.addi %c0_i32, %c2_i32 : i32
    %c1_i32 = arith.constant 1 : i32
    %35 = scf.for %arg30 = %c0_i32 to %34 step %c1_i32 iter_args(%arg31 = %33) -> (vector<5x32xf32>)  : i32 {
      %c4_i32 = arith.constant 4 : i32
      %68 = arith.muli %arg30, %c4_i32 : i32
      %69 = arith.index_cast %arg30 : i32 to index
      %c0_43 = arith.constant 0 : index
      %c0_44 = arith.constant 0 : index
      %70 = vector.load %arg7[%69, %c0_43, %c0_44] : memref<2x1x32xf32, #tpu.memory_space<vmem>>, vector<1x1x32xf32>
      %71 = vector.shape_cast %70 : vector<1x1x32xf32> to vector<1x32xf32>
      %72 = arith.index_cast %arg30 : i32 to index
      %c0_45 = arith.constant 0 : index
      %c0_46 = arith.constant 0 : index
      %73 = vector.load %arg8[%72, %c0_45, %c0_46] : memref<2x1x32xf32, #tpu.memory_space<vmem>>, vector<1x1x32xf32>
      %74 = vector.shape_cast %73 : vector<1x1x32xf32> to vector<1x32xf32>
      %cst_47 = arith.constant dense<0.000000e+00> : vector<5xf32>
      %75 = vector.multi_reduction <add>, %arg31, %cst_47 [1] : vector<5x32xf32> to vector<5xf32>
      %76 = vector.shape_cast %75 : vector<5xf32> to vector<5x1xf32>
      %cst_48 = arith.constant 3.200000e+01 : f32
      %77 = vector.broadcast %cst_48 : f32 to vector<5x1xf32>
      %78 = arith.divf %76, %77 : vector<5x1xf32>
      %79 = vector.broadcast %78 : vector<5x1xf32> to vector<5x32xf32>
      %80 = arith.subf %arg31, %79 : vector<5x32xf32>
      %81 = arith.mulf %80, %80 : vector<5x32xf32>
      %cst_49 = arith.constant dense<0.000000e+00> : vector<5xf32>
      %82 = vector.multi_reduction <add>, %81, %cst_49 [1] : vector<5x32xf32> to vector<5xf32>
      %83 = vector.shape_cast %82 : vector<5xf32> to vector<5x1xf32>
      %cst_50 = arith.constant 3.200000e+01 : f32
      %84 = vector.broadcast %cst_50 : f32 to vector<5x1xf32>
      %85 = arith.divf %83, %84 : vector<5x1xf32>
      %86 = vector.broadcast %78 : vector<5x1xf32> to vector<5x32xf32>
      %87 = arith.subf %arg31, %86 : vector<5x32xf32>
      %cst_51 = arith.constant 9.99999974E-6 : f32
      %88 = vector.broadcast %cst_51 : f32 to vector<5x1xf32>
      %89 = arith.addf %85, %88 : vector<5x1xf32>
      %90 = math.rsqrt %89 : vector<5x1xf32>
      %91 = vector.broadcast %90 : vector<5x1xf32> to vector<5x32xf32>
      %92 = arith.mulf %87, %91 : vector<5x32xf32>
      %93 = vector.broadcast %71 : vector<1x32xf32> to vector<5x32xf32>
      %94 = arith.mulf %92, %93 : vector<5x32xf32>
      %95 = vector.broadcast %74 : vector<1x32xf32> to vector<5x32xf32>
      %96 = arith.addf %94, %95 : vector<5x32xf32>
      %cst_52 = arith.constant 0.000000e+00 : f32
      %97 = vector.broadcast %cst_52 : f32 to vector<5x32xf32>
      %c0_i32_53 = arith.constant 0 : i32
      %98 = arith.addi %68, %c0_i32_53 : i32
      %99 = arith.index_cast %98 : i32 to index
      %c0_54 = arith.constant 0 : index
      %c0_55 = arith.constant 0 : index
      %100 = vector.load %arg9[%99, %c0_54, %c0_55] : memref<8x32x8xf32, #tpu.memory_space<vmem>>, vector<1x32x8xf32>
      %101 = vector.shape_cast %100 : vector<1x32x8xf32> to vector<32x8xf32>
      %cst_56 = arith.constant dense<0.000000e+00> : vector<5x8xf32>
      %102 = tpu.matmul %96, %101, %cst_56 {dimension_numbers = #tpu.dot_dimension_numbers<[1], [0], [0], [1], [0, 0, 1, 1], [], []>} : vector<5x32xf32>, vector<32x8xf32>, vector<5x8xf32> -> vector<5x8xf32>
      %103 = arith.index_cast %98 : i32 to index
      %c0_57 = arith.constant 0 : index
      %c0_58 = arith.constant 0 : index
      %104 = vector.load %arg10[%103, %c0_57, %c0_58] : memref<8x1x8xf32, #tpu.memory_space<vmem>>, vector<1x1x8xf32>
      %105 = vector.shape_cast %104 : vector<1x1x8xf32> to vector<1x8xf32>
      %106 = vector.broadcast %105 : vector<1x8xf32> to vector<5x8xf32>
      %107 = arith.addf %102, %106 : vector<5x8xf32>
      %cst_59 = arith.constant 0.353553385 : f32
      %108 = vector.broadcast %cst_59 : f32 to vector<5x8xf32>
      %109 = arith.mulf %107, %108 : vector<5x8xf32>
      %110 = arith.index_cast %98 : i32 to index
      %c0_60 = arith.constant 0 : index
      %c0_61 = arith.constant 0 : index
      %111 = vector.load %arg11[%110, %c0_60, %c0_61] : memref<8x32x8xf32, #tpu.memory_space<vmem>>, vector<1x32x8xf32>
      %112 = vector.shape_cast %111 : vector<1x32x8xf32> to vector<32x8xf32>
      %cst_62 = arith.constant dense<0.000000e+00> : vector<5x8xf32>
      %113 = tpu.matmul %96, %112, %cst_62 {dimension_numbers = #tpu.dot_dimension_numbers<[1], [0], [0], [1], [0, 0, 1, 1], [], []>} : vector<5x32xf32>, vector<32x8xf32>, vector<5x8xf32> -> vector<5x8xf32>
      %114 = arith.index_cast %98 : i32 to index
      %c0_63 = arith.constant 0 : index
      %c0_64 = arith.constant 0 : index
      %115 = vector.load %arg12[%114, %c0_63, %c0_64] : memref<8x1x8xf32, #tpu.memory_space<vmem>>, vector<1x1x8xf32>
      %116 = vector.shape_cast %115 : vector<1x1x8xf32> to vector<1x8xf32>
      %117 = vector.broadcast %116 : vector<1x8xf32> to vector<5x8xf32>
      %118 = arith.addf %113, %117 : vector<5x8xf32>
      %119 = arith.index_cast %98 : i32 to index
      %c0_65 = arith.constant 0 : index
      %c0_66 = arith.constant 0 : index
      %120 = vector.load %arg13[%119, %c0_65, %c0_66] : memref<8x32x8xf32, #tpu.memory_space<vmem>>, vector<1x32x8xf32>
      %121 = vector.shape_cast %120 : vector<1x32x8xf32> to vector<32x8xf32>
      %cst_67 = arith.constant dense<0.000000e+00> : vector<5x8xf32>
      %122 = tpu.matmul %96, %121, %cst_67 {dimension_numbers = #tpu.dot_dimension_numbers<[1], [0], [0], [1], [0, 0, 1, 1], [], []>} : vector<5x32xf32>, vector<32x8xf32>, vector<5x8xf32> -> vector<5x8xf32>
      %123 = arith.index_cast %98 : i32 to index
      %c0_68 = arith.constant 0 : index
      %c0_69 = arith.constant 0 : index
      %124 = vector.load %arg14[%123, %c0_68, %c0_69] : memref<8x1x8xf32, #tpu.memory_space<vmem>>, vector<1x1x8xf32>
      %125 = vector.shape_cast %124 : vector<1x1x8xf32> to vector<1x8xf32>
      %126 = vector.broadcast %125 : vector<1x8xf32> to vector<5x8xf32>
      %127 = arith.addf %122, %126 : vector<5x8xf32>
      %cst_70 = arith.constant dense<0.000000e+00> : vector<5x5xf32>
      %128 = tpu.matmul %109, %118, %cst_70 {dimension_numbers = #tpu.dot_dimension_numbers<[1], [1], [0], [0], [0, 0, 1, 0], [], []>} : vector<5x8xf32>, vector<5x8xf32>, vector<5x5xf32> -> vector<5x5xf32>
      %cst_71 = arith.constant dense<0xFF800000> : vector<5xf32>
      %129 = vector.multi_reduction <maximumf>, %128, %cst_71 [1] : vector<5x5xf32> to vector<5xf32>
      %130 = vector.shape_cast %129 : vector<5xf32> to vector<5x1xf32>
      %131 = vector.broadcast %130 : vector<5x1xf32> to vector<5x5xf32>
      %132 = arith.subf %128, %131 : vector<5x5xf32>
      %133 = math.exp %132 : vector<5x5xf32>
      %cst_72 = arith.constant dense<0.000000e+00> : vector<5xf32>
      %134 = vector.multi_reduction <add>, %133, %cst_72 [1] : vector<5x5xf32> to vector<5xf32>
      %135 = vector.shape_cast %134 : vector<5xf32> to vector<5x1xf32>
      %136 = tpu.reciprocal %135 {approx = true} : vector<5x1xf32> -> vector<5x1xf32>
      %137 = vector.broadcast %136 : vector<5x1xf32> to vector<5x5xf32>
      %138 = arith.mulf %133, %137 : vector<5x5xf32>
      %cst_73 = arith.constant dense<0.000000e+00> : vector<5x8xf32>
      %139 = tpu.matmul %138, %127, %cst_73 {dimension_numbers = #tpu.dot_dimension_numbers<[1], [0], [0], [1], [0, 0, 1, 1], [], []>} : vector<5x5xf32>, vector<5x8xf32>, vector<5x8xf32> -> vector<5x8xf32>
      %140 = arith.index_cast %98 : i32 to index
      %c0_74 = arith.constant 0 : index
      %c0_75 = arith.constant 0 : index
      %141 = vector.load %arg15[%140, %c0_74, %c0_75] : memref<8x8x32xf32, #tpu.memory_space<vmem>>, vector<1x8x32xf32>
      %142 = vector.shape_cast %141 : vector<1x8x32xf32> to vector<8x32xf32>
      %cst_76 = arith.constant dense<0.000000e+00> : vector<5x32xf32>
      %143 = tpu.matmul %139, %142, %cst_76 {dimension_numbers = #tpu.dot_dimension_numbers<[1], [0], [0], [1], [0, 0, 1, 1], [], []>} : vector<5x8xf32>, vector<8x32xf32>, vector<5x32xf32> -> vector<5x32xf32>
      %144 = arith.addf %97, %143 : vector<5x32xf32>
      %c1_i32_77 = arith.constant 1 : i32
      %145 = arith.addi %68, %c1_i32_77 : i32
      %146 = arith.index_cast %145 : i32 to index
      %c0_78 = arith.constant 0 : index
      %c0_79 = arith.constant 0 : index
      %147 = vector.load %arg9[%146, %c0_78, %c0_79] : memref<8x32x8xf32, #tpu.memory_space<vmem>>, vector<1x32x8xf32>
      %148 = vector.shape_cast %147 : vector<1x32x8xf32> to vector<32x8xf32>
      %cst_80 = arith.constant dense<0.000000e+00> : vector<5x8xf32>
      %149 = tpu.matmul %96, %148, %cst_80 {dimension_numbers = #tpu.dot_dimension_numbers<[1], [0], [0], [1], [0, 0, 1, 1], [], []>} : vector<5x32xf32>, vector<32x8xf32>, vector<5x8xf32> -> vector<5x8xf32>
      %150 = arith.index_cast %145 : i32 to index
      %c0_81 = arith.constant 0 : index
      %c0_82 = arith.constant 0 : index
      %151 = vector.load %arg10[%150, %c0_81, %c0_82] : memref<8x1x8xf32, #tpu.memory_space<vmem>>, vector<1x1x8xf32>
      %152 = vector.shape_cast %151 : vector<1x1x8xf32> to vector<1x8xf32>
      %153 = vector.broadcast %152 : vector<1x8xf32> to vector<5x8xf32>
      %154 = arith.addf %149, %153 : vector<5x8xf32>
      %cst_83 = arith.constant 0.353553385 : f32
      %155 = vector.broadcast %cst_83 : f32 to vector<5x8xf32>
      %156 = arith.mulf %154, %155 : vector<5x8xf32>
      %157 = arith.index_cast %145 : i32 to index
      %c0_84 = arith.constant 0 : index
      %c0_85 = arith.constant 0 : index
      %158 = vector.load %arg11[%157, %c0_84, %c0_85] : memref<8x32x8xf32, #tpu.memory_space<vmem>>, vector<1x32x8xf32>
      %159 = vector.shape_cast %158 : vector<1x32x8xf32> to vector<32x8xf32>
      %cst_86 = arith.constant dense<0.000000e+00> : vector<5x8xf32>
      %160 = tpu.matmul %96, %159, %cst_86 {dimension_numbers = #tpu.dot_dimension_numbers<[1], [0], [0], [1], [0, 0, 1, 1], [], []>} : vector<5x32xf32>, vector<32x8xf32>, vector<5x8xf32> -> vector<5x8xf32>
      %161 = arith.index_cast %145 : i32 to index
      %c0_87 = arith.constant 0 : index
      %c0_88 = arith.constant 0 : index
      %162 = vector.load %arg12[%161, %c0_87, %c0_88] : memref<8x1x8xf32, #tpu.memory_space<vmem>>, vector<1x1x8xf32>
      %163 = vector.shape_cast %162 : vector<1x1x8xf32> to vector<1x8xf32>
      %164 = vector.broadcast %163 : vector<1x8xf32> to vector<5x8xf32>
      %165 = arith.addf %160, %164 : vector<5x8xf32>
      %166 = arith.index_cast %145 : i32 to index
      %c0_89 = arith.constant 0 : index
      %c0_90 = arith.constant 0 : index
      %167 = vector.load %arg13[%166, %c0_89, %c0_90] : memref<8x32x8xf32, #tpu.memory_space<vmem>>, vector<1x32x8xf32>
      %168 = vector.shape_cast %167 : vector<1x32x8xf32> to vector<32x8xf32>
      %cst_91 = arith.constant dense<0.000000e+00> : vector<5x8xf32>
      %169 = tpu.matmul %96, %168, %cst_91 {dimension_numbers = #tpu.dot_dimension_numbers<[1], [0], [0], [1], [0, 0, 1, 1], [], []>} : vector<5x32xf32>, vector<32x8xf32>, vector<5x8xf32> -> vector<5x8xf32>
      %170 = arith.index_cast %145 : i32 to index
      %c0_92 = arith.constant 0 : index
      %c0_93 = arith.constant 0 : index
      %171 = vector.load %arg14[%170, %c0_92, %c0_93] : memref<8x1x8xf32, #tpu.memory_space<vmem>>, vector<1x1x8xf32>
      %172 = vector.shape_cast %171 : vector<1x1x8xf32> to vector<1x8xf32>
      %173 = vector.broadcast %172 : vector<1x8xf32> to vector<5x8xf32>
      %174 = arith.addf %169, %173 : vector<5x8xf32>
      %cst_94 = arith.constant dense<0.000000e+00> : vector<5x5xf32>
      %175 = tpu.matmul %156, %165, %cst_94 {dimension_numbers = #tpu.dot_dimension_numbers<[1], [1], [0], [0], [0, 0, 1, 0], [], []>} : vector<5x8xf32>, vector<5x8xf32>, vector<5x5xf32> -> vector<5x5xf32>
      %cst_95 = arith.constant dense<0xFF800000> : vector<5xf32>
      %176 = vector.multi_reduction <maximumf>, %175, %cst_95 [1] : vector<5x5xf32> to vector<5xf32>
      %177 = vector.shape_cast %176 : vector<5xf32> to vector<5x1xf32>
      %178 = vector.broadcast %177 : vector<5x1xf32> to vector<5x5xf32>
      %179 = arith.subf %175, %178 : vector<5x5xf32>
      %180 = math.exp %179 : vector<5x5xf32>
      %cst_96 = arith.constant dense<0.000000e+00> : vector<5xf32>
      %181 = vector.multi_reduction <add>, %180, %cst_96 [1] : vector<5x5xf32> to vector<5xf32>
      %182 = vector.shape_cast %181 : vector<5xf32> to vector<5x1xf32>
      %183 = tpu.reciprocal %182 {approx = true} : vector<5x1xf32> -> vector<5x1xf32>
      %184 = vector.broadcast %183 : vector<5x1xf32> to vector<5x5xf32>
      %185 = arith.mulf %180, %184 : vector<5x5xf32>
      %cst_97 = arith.constant dense<0.000000e+00> : vector<5x8xf32>
      %186 = tpu.matmul %185, %174, %cst_97 {dimension_numbers = #tpu.dot_dimension_numbers<[1], [0], [0], [1], [0, 0, 1, 1], [], []>} : vector<5x5xf32>, vector<5x8xf32>, vector<5x8xf32> -> vector<5x8xf32>
      %187 = arith.index_cast %145 : i32 to index
      %c0_98 = arith.constant 0 : index
      %c0_99 = arith.constant 0 : index
      %188 = vector.load %arg15[%187, %c0_98, %c0_99] : memref<8x8x32xf32, #tpu.memory_space<vmem>>, vector<1x8x32xf32>
      %189 = vector.shape_cast %188 : vector<1x8x32xf32> to vector<8x32xf32>
      %cst_100 = arith.constant dense<0.000000e+00> : vector<5x32xf32>
      %190 = tpu.matmul %186, %189, %cst_100 {dimension_numbers = #tpu.dot_dimension_numbers<[1], [0], [0], [1], [0, 0, 1, 1], [], []>} : vector<5x8xf32>, vector<8x32xf32>, vector<5x32xf32> -> vector<5x32xf32>
      %191 = arith.addf %144, %190 : vector<5x32xf32>
      %c2_i32_101 = arith.constant 2 : i32
      %192 = arith.addi %68, %c2_i32_101 : i32
      %193 = arith.index_cast %192 : i32 to index
      %c0_102 = arith.constant 0 : index
      %c0_103 = arith.constant 0 : index
      %194 = vector.load %arg9[%193, %c0_102, %c0_103] : memref<8x32x8xf32, #tpu.memory_space<vmem>>, vector<1x32x8xf32>
      %195 = vector.shape_cast %194 : vector<1x32x8xf32> to vector<32x8xf32>
      %cst_104 = arith.constant dense<0.000000e+00> : vector<5x8xf32>
      %196 = tpu.matmul %96, %195, %cst_104 {dimension_numbers = #tpu.dot_dimension_numbers<[1], [0], [0], [1], [0, 0, 1, 1], [], []>} : vector<5x32xf32>, vector<32x8xf32>, vector<5x8xf32> -> vector<5x8xf32>
      %197 = arith.index_cast %192 : i32 to index
      %c0_105 = arith.constant 0 : index
      %c0_106 = arith.constant 0 : index
      %198 = vector.load %arg10[%197, %c0_105, %c0_106] : memref<8x1x8xf32, #tpu.memory_space<vmem>>, vector<1x1x8xf32>
      %199 = vector.shape_cast %198 : vector<1x1x8xf32> to vector<1x8xf32>
      %200 = vector.broadcast %199 : vector<1x8xf32> to vector<5x8xf32>
      %201 = arith.addf %196, %200 : vector<5x8xf32>
      %cst_107 = arith.constant 0.353553385 : f32
      %202 = vector.broadcast %cst_107 : f32 to vector<5x8xf32>
      %203 = arith.mulf %201, %202 : vector<5x8xf32>
      %204 = arith.index_cast %192 : i32 to index
      %c0_108 = arith.constant 0 : index
      %c0_109 = arith.constant 0 : index
      %205 = vector.load %arg11[%204, %c0_108, %c0_109] : memref<8x32x8xf32, #tpu.memory_space<vmem>>, vector<1x32x8xf32>
      %206 = vector.shape_cast %205 : vector<1x32x8xf32> to vector<32x8xf32>
      %cst_110 = arith.constant dense<0.000000e+00> : vector<5x8xf32>
      %207 = tpu.matmul %96, %206, %cst_110 {dimension_numbers = #tpu.dot_dimension_numbers<[1], [0], [0], [1], [0, 0, 1, 1], [], []>} : vector<5x32xf32>, vector<32x8xf32>, vector<5x8xf32> -> vector<5x8xf32>
      %208 = arith.index_cast %192 : i32 to index
      %c0_111 = arith.constant 0 : index
      %c0_112 = arith.constant 0 : index
      %209 = vector.load %arg12[%208, %c0_111, %c0_112] : memref<8x1x8xf32, #tpu.memory_space<vmem>>, vector<1x1x8xf32>
      %210 = vector.shape_cast %209 : vector<1x1x8xf32> to vector<1x8xf32>
      %211 = vector.broadcast %210 : vector<1x8xf32> to vector<5x8xf32>
      %212 = arith.addf %207, %211 : vector<5x8xf32>
      %213 = arith.index_cast %192 : i32 to index
      %c0_113 = arith.constant 0 : index
      %c0_114 = arith.constant 0 : index
      %214 = vector.load %arg13[%213, %c0_113, %c0_114] : memref<8x32x8xf32, #tpu.memory_space<vmem>>, vector<1x32x8xf32>
      %215 = vector.shape_cast %214 : vector<1x32x8xf32> to vector<32x8xf32>
      %cst_115 = arith.constant dense<0.000000e+00> : vector<5x8xf32>
      %216 = tpu.matmul %96, %215, %cst_115 {dimension_numbers = #tpu.dot_dimension_numbers<[1], [0], [0], [1], [0, 0, 1, 1], [], []>} : vector<5x32xf32>, vector<32x8xf32>, vector<5x8xf32> -> vector<5x8xf32>
      %217 = arith.index_cast %192 : i32 to index
      %c0_116 = arith.constant 0 : index
      %c0_117 = arith.constant 0 : index
      %218 = vector.load %arg14[%217, %c0_116, %c0_117] : memref<8x1x8xf32, #tpu.memory_space<vmem>>, vector<1x1x8xf32>
      %219 = vector.shape_cast %218 : vector<1x1x8xf32> to vector<1x8xf32>
      %220 = vector.broadcast %219 : vector<1x8xf32> to vector<5x8xf32>
      %221 = arith.addf %216, %220 : vector<5x8xf32>
      %cst_118 = arith.constant dense<0.000000e+00> : vector<5x5xf32>
      %222 = tpu.matmul %203, %212, %cst_118 {dimension_numbers = #tpu.dot_dimension_numbers<[1], [1], [0], [0], [0, 0, 1, 0], [], []>} : vector<5x8xf32>, vector<5x8xf32>, vector<5x5xf32> -> vector<5x5xf32>
      %cst_119 = arith.constant dense<0xFF800000> : vector<5xf32>
      %223 = vector.multi_reduction <maximumf>, %222, %cst_119 [1] : vector<5x5xf32> to vector<5xf32>
      %224 = vector.shape_cast %223 : vector<5xf32> to vector<5x1xf32>
      %225 = vector.broadcast %224 : vector<5x1xf32> to vector<5x5xf32>
      %226 = arith.subf %222, %225 : vector<5x5xf32>
      %227 = math.exp %226 : vector<5x5xf32>
      %cst_120 = arith.constant dense<0.000000e+00> : vector<5xf32>
      %228 = vector.multi_reduction <add>, %227, %cst_120 [1] : vector<5x5xf32> to vector<5xf32>
      %229 = vector.shape_cast %228 : vector<5xf32> to vector<5x1xf32>
      %230 = tpu.reciprocal %229 {approx = true} : vector<5x1xf32> -> vector<5x1xf32>
      %231 = vector.broadcast %230 : vector<5x1xf32> to vector<5x5xf32>
      %232 = arith.mulf %227, %231 : vector<5x5xf32>
      %cst_121 = arith.constant dense<0.000000e+00> : vector<5x8xf32>
      %233 = tpu.matmul %232, %221, %cst_121 {dimension_numbers = #tpu.dot_dimension_numbers<[1], [0], [0], [1], [0, 0, 1, 1], [], []>} : vector<5x5xf32>, vector<5x8xf32>, vector<5x8xf32> -> vector<5x8xf32>
      %234 = arith.index_cast %192 : i32 to index
      %c0_122 = arith.constant 0 : index
      %c0_123 = arith.constant 0 : index
      %235 = vector.load %arg15[%234, %c0_122, %c0_123] : memref<8x8x32xf32, #tpu.memory_space<vmem>>, vector<1x8x32xf32>
      %236 = vector.shape_cast %235 : vector<1x8x32xf32> to vector<8x32xf32>
      %cst_124 = arith.constant dense<0.000000e+00> : vector<5x32xf32>
      %237 = tpu.matmul %233, %236, %cst_124 {dimension_numbers = #tpu.dot_dimension_numbers<[1], [0], [0], [1], [0, 0, 1, 1], [], []>} : vector<5x8xf32>, vector<8x32xf32>, vector<5x32xf32> -> vector<5x32xf32>
      %238 = arith.addf %191, %237 : vector<5x32xf32>
      %c3_i32 = arith.constant 3 : i32
      %239 = arith.addi %68, %c3_i32 : i32
      %240 = arith.index_cast %239 : i32 to index
      %c0_125 = arith.constant 0 : index
      %c0_126 = arith.constant 0 : index
      %241 = vector.load %arg9[%240, %c0_125, %c0_126] : memref<8x32x8xf32, #tpu.memory_space<vmem>>, vector<1x32x8xf32>
      %242 = vector.shape_cast %241 : vector<1x32x8xf32> to vector<32x8xf32>
      %cst_127 = arith.constant dense<0.000000e+00> : vector<5x8xf32>
      %243 = tpu.matmul %96, %242, %cst_127 {dimension_numbers = #tpu.dot_dimension_numbers<[1], [0], [0], [1], [0, 0, 1, 1], [], []>} : vector<5x32xf32>, vector<32x8xf32>, vector<5x8xf32> -> vector<5x8xf32>
      %244 = arith.index_cast %239 : i32 to index
      %c0_128 = arith.constant 0 : index
      %c0_129 = arith.constant 0 : index
      %245 = vector.load %arg10[%244, %c0_128, %c0_129] : memref<8x1x8xf32, #tpu.memory_space<vmem>>, vector<1x1x8xf32>
      %246 = vector.shape_cast %245 : vector<1x1x8xf32> to vector<1x8xf32>
      %247 = vector.broadcast %246 : vector<1x8xf32> to vector<5x8xf32>
      %248 = arith.addf %243, %247 : vector<5x8xf32>
      %cst_130 = arith.constant 0.353553385 : f32
      %249 = vector.broadcast %cst_130 : f32 to vector<5x8xf32>
      %250 = arith.mulf %248, %249 : vector<5x8xf32>
      %251 = arith.index_cast %239 : i32 to index
      %c0_131 = arith.constant 0 : index
      %c0_132 = arith.constant 0 : index
      %252 = vector.load %arg11[%251, %c0_131, %c0_132] : memref<8x32x8xf32, #tpu.memory_space<vmem>>, vector<1x32x8xf32>
      %253 = vector.shape_cast %252 : vector<1x32x8xf32> to vector<32x8xf32>
      %cst_133 = arith.constant dense<0.000000e+00> : vector<5x8xf32>
      %254 = tpu.matmul %96, %253, %cst_133 {dimension_numbers = #tpu.dot_dimension_numbers<[1], [0], [0], [1], [0, 0, 1, 1], [], []>} : vector<5x32xf32>, vector<32x8xf32>, vector<5x8xf32> -> vector<5x8xf32>
      %255 = arith.index_cast %239 : i32 to index
      %c0_134 = arith.constant 0 : index
      %c0_135 = arith.constant 0 : index
      %256 = vector.load %arg12[%255, %c0_134, %c0_135] : memref<8x1x8xf32, #tpu.memory_space<vmem>>, vector<1x1x8xf32>
      %257 = vector.shape_cast %256 : vector<1x1x8xf32> to vector<1x8xf32>
      %258 = vector.broadcast %257 : vector<1x8xf32> to vector<5x8xf32>
      %259 = arith.addf %254, %258 : vector<5x8xf32>
      %260 = arith.index_cast %239 : i32 to index
      %c0_136 = arith.constant 0 : index
      %c0_137 = arith.constant 0 : index
      %261 = vector.load %arg13[%260, %c0_136, %c0_137] : memref<8x32x8xf32, #tpu.memory_space<vmem>>, vector<1x32x8xf32>
      %262 = vector.shape_cast %261 : vector<1x32x8xf32> to vector<32x8xf32>
      %cst_138 = arith.constant dense<0.000000e+00> : vector<5x8xf32>
      %263 = tpu.matmul %96, %262, %cst_138 {dimension_numbers = #tpu.dot_dimension_numbers<[1], [0], [0], [1], [0, 0, 1, 1], [], []>} : vector<5x32xf32>, vector<32x8xf32>, vector<5x8xf32> -> vector<5x8xf32>
      %264 = arith.index_cast %239 : i32 to index
      %c0_139 = arith.constant 0 : index
      %c0_140 = arith.constant 0 : index
      %265 = vector.load %arg14[%264, %c0_139, %c0_140] : memref<8x1x8xf32, #tpu.memory_space<vmem>>, vector<1x1x8xf32>
      %266 = vector.shape_cast %265 : vector<1x1x8xf32> to vector<1x8xf32>
      %267 = vector.broadcast %266 : vector<1x8xf32> to vector<5x8xf32>
      %268 = arith.addf %263, %267 : vector<5x8xf32>
      %cst_141 = arith.constant dense<0.000000e+00> : vector<5x5xf32>
      %269 = tpu.matmul %250, %259, %cst_141 {dimension_numbers = #tpu.dot_dimension_numbers<[1], [1], [0], [0], [0, 0, 1, 0], [], []>} : vector<5x8xf32>, vector<5x8xf32>, vector<5x5xf32> -> vector<5x5xf32>
      %cst_142 = arith.constant dense<0xFF800000> : vector<5xf32>
      %270 = vector.multi_reduction <maximumf>, %269, %cst_142 [1] : vector<5x5xf32> to vector<5xf32>
      %271 = vector.shape_cast %270 : vector<5xf32> to vector<5x1xf32>
      %272 = vector.broadcast %271 : vector<5x1xf32> to vector<5x5xf32>
      %273 = arith.subf %269, %272 : vector<5x5xf32>
      %274 = math.exp %273 : vector<5x5xf32>
      %cst_143 = arith.constant dense<0.000000e+00> : vector<5xf32>
      %275 = vector.multi_reduction <add>, %274, %cst_143 [1] : vector<5x5xf32> to vector<5xf32>
      %276 = vector.shape_cast %275 : vector<5xf32> to vector<5x1xf32>
      %277 = tpu.reciprocal %276 {approx = true} : vector<5x1xf32> -> vector<5x1xf32>
      %278 = vector.broadcast %277 : vector<5x1xf32> to vector<5x5xf32>
      %279 = arith.mulf %274, %278 : vector<5x5xf32>
      %cst_144 = arith.constant dense<0.000000e+00> : vector<5x8xf32>
      %280 = tpu.matmul %279, %268, %cst_144 {dimension_numbers = #tpu.dot_dimension_numbers<[1], [0], [0], [1], [0, 0, 1, 1], [], []>} : vector<5x5xf32>, vector<5x8xf32>, vector<5x8xf32> -> vector<5x8xf32>
      %281 = arith.index_cast %239 : i32 to index
      %c0_145 = arith.constant 0 : index
      %c0_146 = arith.constant 0 : index
      %282 = vector.load %arg15[%281, %c0_145, %c0_146] : memref<8x8x32xf32, #tpu.memory_space<vmem>>, vector<1x8x32xf32>
      %283 = vector.shape_cast %282 : vector<1x8x32xf32> to vector<8x32xf32>
      %cst_147 = arith.constant dense<0.000000e+00> : vector<5x32xf32>
      %284 = tpu.matmul %280, %283, %cst_147 {dimension_numbers = #tpu.dot_dimension_numbers<[1], [0], [0], [1], [0, 0, 1, 1], [], []>} : vector<5x8xf32>, vector<8x32xf32>, vector<5x32xf32> -> vector<5x32xf32>
      %285 = arith.addf %238, %284 : vector<5x32xf32>
      %286 = arith.addf %arg31, %285 : vector<5x32xf32>
      %287 = arith.index_cast %arg30 : i32 to index
      %c0_148 = arith.constant 0 : index
      %c0_149 = arith.constant 0 : index
      %288 = vector.load %arg16[%287, %c0_148, %c0_149] : memref<2x1x32xf32, #tpu.memory_space<vmem>>, vector<1x1x32xf32>
      %289 = vector.shape_cast %288 : vector<1x1x32xf32> to vector<1x32xf32>
      %290 = vector.broadcast %289 : vector<1x32xf32> to vector<5x32xf32>
      %291 = arith.addf %286, %290 : vector<5x32xf32>
      %292 = arith.index_cast %arg30 : i32 to index
      %c0_150 = arith.constant 0 : index
      %c0_151 = arith.constant 0 : index
      %293 = vector.load %arg17[%292, %c0_150, %c0_151] : memref<2x1x32xf32, #tpu.memory_space<vmem>>, vector<1x1x32xf32>
      %294 = vector.shape_cast %293 : vector<1x1x32xf32> to vector<1x32xf32>
      %295 = arith.index_cast %arg30 : i32 to index
      %c0_152 = arith.constant 0 : index
      %c0_153 = arith.constant 0 : index
      %296 = vector.load %arg18[%295, %c0_152, %c0_153] : memref<2x1x32xf32, #tpu.memory_space<vmem>>, vector<1x1x32xf32>
      %297 = vector.shape_cast %296 : vector<1x1x32xf32> to vector<1x32xf32>
      %cst_154 = arith.constant dense<0.000000e+00> : vector<5xf32>
      %298 = vector.multi_reduction <add>, %291, %cst_154 [1] : vector<5x32xf32> to vector<5xf32>
      %299 = vector.shape_cast %298 : vector<5xf32> to vector<5x1xf32>
      %cst_155 = arith.constant 3.200000e+01 : f32
      %300 = vector.broadcast %cst_155 : f32 to vector<5x1xf32>
      %301 = arith.divf %299, %300 : vector<5x1xf32>
      %302 = vector.broadcast %301 : vector<5x1xf32> to vector<5x32xf32>
      %303 = arith.subf %291, %302 : vector<5x32xf32>
      %304 = arith.mulf %303, %303 : vector<5x32xf32>
      %cst_156 = arith.constant dense<0.000000e+00> : vector<5xf32>
      %305 = vector.multi_reduction <add>, %304, %cst_156 [1] : vector<5x32xf32> to vector<5xf32>
      %306 = vector.shape_cast %305 : vector<5xf32> to vector<5x1xf32>
      %cst_157 = arith.constant 3.200000e+01 : f32
      %307 = vector.broadcast %cst_157 : f32 to vector<5x1xf32>
      %308 = arith.divf %306, %307 : vector<5x1xf32>
      %309 = vector.broadcast %301 : vector<5x1xf32> to vector<5x32xf32>
      %310 = arith.subf %291, %309 : vector<5x32xf32>
      %cst_158 = arith.constant 9.99999974E-6 : f32
      %311 = vector.broadcast %cst_158 : f32 to vector<5x1xf32>
      %312 = arith.addf %308, %311 : vector<5x1xf32>
      %313 = math.rsqrt %312 : vector<5x1xf32>
      %314 = vector.broadcast %313 : vector<5x1xf32> to vector<5x32xf32>
      %315 = arith.mulf %310, %314 : vector<5x32xf32>
      %316 = vector.broadcast %294 : vector<1x32xf32> to vector<5x32xf32>
      %317 = arith.mulf %315, %316 : vector<5x32xf32>
      %318 = vector.broadcast %297 : vector<1x32xf32> to vector<5x32xf32>
      %319 = arith.addf %317, %318 : vector<5x32xf32>
      %320 = arith.index_cast %arg30 : i32 to index
      %c0_159 = arith.constant 0 : index
      %c0_160 = arith.constant 0 : index
      %321 = vector.load %arg19[%320, %c0_159, %c0_160] : memref<2x32x128xf32, #tpu.memory_space<vmem>>, vector<1x32x128xf32>
      %322 = vector.shape_cast %321 : vector<1x32x128xf32> to vector<32x128xf32>
      %cst_161 = arith.constant dense<0.000000e+00> : vector<5x128xf32>
      %323 = tpu.matmul %319, %322, %cst_161 {dimension_numbers = #tpu.dot_dimension_numbers<[1], [0], [0], [1], [0, 0, 1, 1], [], []>} : vector<5x32xf32>, vector<32x128xf32>, vector<5x128xf32> -> vector<5x128xf32>
      %324 = arith.index_cast %arg30 : i32 to index
      %c0_162 = arith.constant 0 : index
      %c0_163 = arith.constant 0 : index
      %325 = vector.load %arg20[%324, %c0_162, %c0_163] : memref<2x1x128xf32, #tpu.memory_space<vmem>>, vector<1x1x128xf32>
      %326 = vector.shape_cast %325 : vector<1x1x128xf32> to vector<1x128xf32>
      %327 = vector.broadcast %326 : vector<1x128xf32> to vector<5x128xf32>
      %328 = arith.addf %323, %327 : vector<5x128xf32>
      %cst_164 = arith.constant 1.702000e+00 : f32
      %329 = vector.broadcast %cst_164 : f32 to vector<5x128xf32>
      %330 = arith.mulf %329, %328 : vector<5x128xf32>
      %331 = arith.negf %330 : vector<5x128xf32>
      %332 = math.exp %331 : vector<5x128xf32>
      %cst_165 = arith.constant 1.000000e+00 : f32
      %333 = vector.broadcast %cst_165 : f32 to vector<5x128xf32>
      %334 = arith.addf %333, %332 : vector<5x128xf32>
      %335 = arith.divf %333, %334 : vector<5x128xf32>
      %336 = arith.mulf %328, %335 : vector<5x128xf32>
      %337 = arith.index_cast %arg30 : i32 to index
      %c0_166 = arith.constant 0 : index
      %c0_167 = arith.constant 0 : index
      %338 = vector.load %arg21[%337, %c0_166, %c0_167] : memref<2x128x32xf32, #tpu.memory_space<vmem>>, vector<1x128x32xf32>
      %339 = vector.shape_cast %338 : vector<1x128x32xf32> to vector<128x32xf32>
      %cst_168 = arith.constant dense<0.000000e+00> : vector<5x32xf32>
      %340 = tpu.matmul %336, %339, %cst_168 {dimension_numbers = #tpu.dot_dimension_numbers<[1], [0], [0], [1], [0, 0, 1, 1], [], []>} : vector<5x128xf32>, vector<128x32xf32>, vector<5x32xf32> -> vector<5x32xf32>
      %341 = arith.index_cast %arg30 : i32 to index
      %c0_169 = arith.constant 0 : index
      %c0_170 = arith.constant 0 : index
      %342 = vector.load %arg22[%341, %c0_169, %c0_170] : memref<2x1x32xf32, #tpu.memory_space<vmem>>, vector<1x1x32xf32>
      %343 = vector.shape_cast %342 : vector<1x1x32xf32> to vector<1x32xf32>
      %344 = vector.broadcast %343 : vector<1x32xf32> to vector<5x32xf32>
      %345 = arith.addf %340, %344 : vector<5x32xf32>
      %346 = arith.addf %291, %345 : vector<5x32xf32>
      scf.yield %346 : vector<5x32xf32>
    }
    %c2_i32_22 = arith.constant 2 : i32
    %36 = vector.extract_strided_slice %35 {offsets = [0, 0], sizes = [1, 32], strides = [1, 1]} : vector<5x32xf32> to vector<1x32xf32>
    %c0_23 = arith.constant 0 : index
    %c0_24 = arith.constant 0 : index
    %37 = vector.load %arg23[%c0_23, %c0_24] : memref<1x32xf32, #tpu.memory_space<vmem>>, vector<1x32xf32>
    %c0_25 = arith.constant 0 : index
    %c0_26 = arith.constant 0 : index
    %38 = vector.load %arg24[%c0_25, %c0_26] : memref<1x32xf32, #tpu.memory_space<vmem>>, vector<1x32xf32>
    %cst_27 = arith.constant dense<0.000000e+00> : vector<1xf32>
    %39 = vector.multi_reduction <add>, %36, %cst_27 [1] : vector<1x32xf32> to vector<1xf32>
    %40 = vector.shape_cast %39 : vector<1xf32> to vector<1x1xf32>
    %cst_28 = arith.constant 3.200000e+01 : f32
    %41 = vector.broadcast %cst_28 : f32 to vector<1x1xf32>
    %42 = arith.divf %40, %41 : vector<1x1xf32>
    %43 = vector.broadcast %42 : vector<1x1xf32> to vector<1x32xf32>
    %44 = arith.subf %36, %43 : vector<1x32xf32>
    %45 = arith.mulf %44, %44 : vector<1x32xf32>
    %cst_29 = arith.constant dense<0.000000e+00> : vector<1xf32>
    %46 = vector.multi_reduction <add>, %45, %cst_29 [1] : vector<1x32xf32> to vector<1xf32>
    %47 = vector.shape_cast %46 : vector<1xf32> to vector<1x1xf32>
    %cst_30 = arith.constant 3.200000e+01 : f32
    %48 = vector.broadcast %cst_30 : f32 to vector<1x1xf32>
    %49 = arith.divf %47, %48 : vector<1x1xf32>
    %50 = vector.broadcast %42 : vector<1x1xf32> to vector<1x32xf32>
    %51 = arith.subf %36, %50 : vector<1x32xf32>
    %cst_31 = arith.constant 9.99999974E-6 : f32
    %52 = vector.broadcast %cst_31 : f32 to vector<1x1xf32>
    %53 = arith.addf %49, %52 : vector<1x1xf32>
    %54 = math.rsqrt %53 : vector<1x1xf32>
    %55 = vector.broadcast %54 : vector<1x1xf32> to vector<1x32xf32>
    %56 = arith.mulf %51, %55 : vector<1x32xf32>
    %57 = arith.mulf %56, %37 : vector<1x32xf32>
    %58 = arith.addf %57, %38 : vector<1x32xf32>
    %c0_32 = arith.constant 0 : index
    %c0_33 = arith.constant 0 : index
    %59 = vector.load %arg25[%c0_32, %c0_33] : memref<32x16xf32, #tpu.memory_space<vmem>>, vector<32x16xf32>
    %cst_34 = arith.constant dense<0.000000e+00> : vector<1x16xf32>
    %60 = tpu.matmul %58, %59, %cst_34 {dimension_numbers = #tpu.dot_dimension_numbers<[1], [0], [0], [1], [0, 0, 1, 1], [], []>} : vector<1x32xf32>, vector<32x16xf32>, vector<1x16xf32> -> vector<1x16xf32>
    %c0_35 = arith.constant 0 : index
    %c0_36 = arith.constant 0 : index
    %61 = vector.load %arg26[%c0_35, %c0_36] : memref<16x128xf32, #tpu.memory_space<vmem>>, vector<16x128xf32>
    %cst_37 = arith.constant dense<0.000000e+00> : vector<1x128xf32>
    %62 = tpu.matmul %60, %61, %cst_37 {dimension_numbers = #tpu.dot_dimension_numbers<[1], [0], [0], [1], [0, 0, 1, 1], [], []>} : vector<1x16xf32>, vector<16x128xf32>, vector<1x128xf32> -> vector<1x128xf32>
    %c0_38 = arith.constant 0 : index
    %c0_39 = arith.constant 0 : index
    %63 = vector.load %arg27[%c0_38, %c0_39] : memref<1x128xf32, #tpu.memory_space<vmem>>, vector<1x128xf32>
    %64 = arith.addf %62, %63 : vector<1x128xf32>
    %c0_40 = arith.constant 0 : index
    %c0_41 = arith.constant 0 : index
    %c0_42 = arith.constant 0 : index
    %65 = vector.load %arg28[%c0_40, %c0_41, %c0_42] : memref<1x1x128xf32, #tpu.memory_space<vmem>>, vector<1x1x128xf32>
    %66 = vector.shape_cast %65 : vector<1x1x128xf32> to vector<1x128xf32>
    %67 = vector.shape_cast %64 : vector<1x128xf32> to vector<1x1x128xf32>
    tpu.vector_store %arg28[%c0_40, %c0_41, %c0_42], %67 {strides = array<i32>} : memref<1x1x128xf32, #tpu.memory_space<vmem>>, vector<1x1x128xf32>,
    return
  }
  func.func @transform_0(%arg0: i32) -> (i32, i32, i32) {
    %c0_i32 = arith.constant 0 : i32
    %c0_i32_0 = arith.constant 0 : i32
    %c0_i32_1 = arith.constant 0 : i32
    return %arg0, %c0_i32, %c0_i32_0 : i32, i32, i32
  }
  func.func @transform_1(%arg0: i32) -> (i32, i32) {
    %c0_i32 = arith.constant 0 : i32
    %c0_i32_0 = arith.constant 0 : i32
    %c0_i32_1 = arith.constant 0 : i32
    return %c0_i32, %c0_i32_0 : i32, i32
  }
  func.func @transform_2(%arg0: i32) -> (i32, i32) {
    %c0_i32 = arith.constant 0 : i32
    %c0_i32_0 = arith.constant 0 : i32
    %c0_i32_1 = arith.constant 0 : i32
    return %c0_i32, %c0_i32_0 : i32, i32
  }
  func.func @transform_3(%arg0: i32) -> (i32, i32) {
    %c0_i32 = arith.constant 0 : i32
    %c0_i32_0 = arith.constant 0 : i32
    %c0_i32_1 = arith.constant 0 : i32
    return %c0_i32, %c0_i32_0 : i32, i32
  }
  func.func @transform_4(%arg0: i32) -> (i32, i32) {
    %c0_i32 = arith.constant 0 : i32
    %c0_i32_0 = arith.constant 0 : i32
    %c0_i32_1 = arith.constant 0 : i32
    return %c0_i32, %c0_i32_0 : i32, i32
  }
  func.func @transform_5(%arg0: i32) -> (i32, i32) {
    %c0_i32 = arith.constant 0 : i32
    %c0_i32_0 = arith.constant 0 : i32
    %c0_i32_1 = arith.constant 0 : i32
    return %c0_i32, %c0_i32_0 : i32, i32
  }
  func.func @transform_6(%arg0: i32) -> (i32, i32, i32) {
    %c0_i32 = arith.constant 0 : i32
    %c0_i32_0 = arith.constant 0 : i32
    %c0_i32_1 = arith.constant 0 : i32
    %c0_i32_2 = arith.constant 0 : i32
    return %c0_i32, %c0_i32_0, %c0_i32_1 : i32, i32, i32
  }
  func.func @transform_7(%arg0: i32) -> (i32, i32, i32) {
    %c0_i32 = arith.constant 0 : i32
    %c0_i32_0 = arith.constant 0 : i32
    %c0_i32_1 = arith.constant 0 : i32
    %c0_i32_2 = arith.constant 0 : i32
    return %c0_i32, %c0_i32_0, %c0_i32_1 : i32, i32, i32
  }
  func.func @transform_8(%arg0: i32) -> (i32, i32, i32) {
    %c0_i32 = arith.constant 0 : i32
    %c0_i32_0 = arith.constant 0 : i32
    %c0_i32_1 = arith.constant 0 : i32
    %c0_i32_2 = arith.constant 0 : i32
    return %c0_i32, %c0_i32_0, %c0_i32_1 : i32, i32, i32
  }
  func.func @transform_9(%arg0: i32) -> (i32, i32, i32) {
    %c0_i32 = arith.constant 0 : i32
    %c0_i32_0 = arith.constant 0 : i32
    %c0_i32_1 = arith.constant 0 : i32
    %c0_i32_2 = arith.constant 0 : i32
    return %c0_i32, %c0_i32_0, %c0_i32_1 : i32, i32, i32
  }
  func.func @transform_10(%arg0: i32) -> (i32, i32, i32) {
    %c0_i32 = arith.constant 0 : i32
    %c0_i32_0 = arith.constant 0 : i32
    %c0_i32_1 = arith.constant 0 : i32
    %c0_i32_2 = arith.constant 0 : i32
    return %c0_i32, %c0_i32_0, %c0_i32_1 : i32, i32, i32
  }
  func.func @transform_11(%arg0: i32) -> (i32, i32, i32) {
    %c0_i32 = arith.constant 0 : i32
    %c0_i32_0 = arith.constant 0 : i32
    %c0_i32_1 = arith.constant 0 : i32
    %c0_i32_2 = arith.constant 0 : i32
    return %c0_i32, %c0_i32_0, %c0_i32_1 : i32, i32, i32
  }
  func.func @transform_12(%arg0: i32) -> (i32, i32, i32) {
    %c0_i32 = arith.constant 0 : i32
    %c0_i32_0 = arith.constant 0 : i32
    %c0_i32_1 = arith.constant 0 : i32
    %c0_i32_2 = arith.constant 0 : i32
    return %c0_i32, %c0_i32_0, %c0_i32_1 : i32, i32, i32
  }
  func.func @transform_13(%arg0: i32) -> (i32, i32, i32) {
    %c0_i32 = arith.constant 0 : i32
    %c0_i32_0 = arith.constant 0 : i32
    %c0_i32_1 = arith.constant 0 : i32
    %c0_i32_2 = arith.constant 0 : i32
    return %c0_i32, %c0_i32_0, %c0_i32_1 : i32, i32, i32
  }
  func.func @transform_14(%arg0: i32) -> (i32, i32, i32) {
    %c0_i32 = arith.constant 0 : i32
    %c0_i32_0 = arith.constant 0 : i32
    %c0_i32_1 = arith.constant 0 : i32
    %c0_i32_2 = arith.constant 0 : i32
    return %c0_i32, %c0_i32_0, %c0_i32_1 : i32, i32, i32
  }
  func.func @transform_15(%arg0: i32) -> (i32, i32, i32) {
    %c0_i32 = arith.constant 0 : i32
    %c0_i32_0 = arith.constant 0 : i32
    %c0_i32_1 = arith.constant 0 : i32
    %c0_i32_2 = arith.constant 0 : i32
    return %c0_i32, %c0_i32_0, %c0_i32_1 : i32, i32, i32
  }
  func.func @transform_16(%arg0: i32) -> (i32, i32, i32) {
    %c0_i32 = arith.constant 0 : i32
    %c0_i32_0 = arith.constant 0 : i32
    %c0_i32_1 = arith.constant 0 : i32
    %c0_i32_2 = arith.constant 0 : i32
    return %c0_i32, %c0_i32_0, %c0_i32_1 : i32, i32, i32
  }
  func.func @transform_17(%arg0: i32) -> (i32, i32, i32) {
    %c0_i32 = arith.constant 0 : i32
    %c0_i32_0 = arith.constant 0 : i32
    %c0_i32_1 = arith.constant 0 : i32
    %c0_i32_2 = arith.constant 0 : i32
    return %c0_i32, %c0_i32_0, %c0_i32_1 : i32, i32, i32
  }
  func.func @transform_18(%arg0: i32) -> (i32, i32, i32) {
    %c0_i32 = arith.constant 0 : i32
    %c0_i32_0 = arith.constant 0 : i32
    %c0_i32_1 = arith.constant 0 : i32
    %c0_i32_2 = arith.constant 0 : i32
    return %c0_i32, %c0_i32_0, %c0_i32_1 : i32, i32, i32
  }
  func.func @transform_19(%arg0: i32) -> (i32, i32, i32) {
    %c0_i32 = arith.constant 0 : i32
    %c0_i32_0 = arith.constant 0 : i32
    %c0_i32_1 = arith.constant 0 : i32
    %c0_i32_2 = arith.constant 0 : i32
    return %c0_i32, %c0_i32_0, %c0_i32_1 : i32, i32, i32
  }
  func.func @transform_20(%arg0: i32) -> (i32, i32, i32) {
    %c0_i32 = arith.constant 0 : i32
    %c0_i32_0 = arith.constant 0 : i32
    %c0_i32_1 = arith.constant 0 : i32
    %c0_i32_2 = arith.constant 0 : i32
    return %c0_i32, %c0_i32_0, %c0_i32_1 : i32, i32, i32
  }
  func.func @transform_21(%arg0: i32) -> (i32, i32, i32) {
    %c0_i32 = arith.constant 0 : i32
    %c0_i32_0 = arith.constant 0 : i32
    %c0_i32_1 = arith.constant 0 : i32
    %c0_i32_2 = arith.constant 0 : i32
    return %c0_i32, %c0_i32_0, %c0_i32_1 : i32, i32, i32
  }
  func.func @transform_22(%arg0: i32) -> (i32, i32) {
    %c0_i32 = arith.constant 0 : i32
    %c0_i32_0 = arith.constant 0 : i32
    %c0_i32_1 = arith.constant 0 : i32
    return %c0_i32, %c0_i32_0 : i32, i32
  }
  func.func @transform_23(%arg0: i32) -> (i32, i32) {
    %c0_i32 = arith.constant 0 : i32
    %c0_i32_0 = arith.constant 0 : i32
    %c0_i32_1 = arith.constant 0 : i32
    return %c0_i32, %c0_i32_0 : i32, i32
  }
  func.func @transform_24(%arg0: i32) -> (i32, i32) {
    %c0_i32 = arith.constant 0 : i32
    %c0_i32_0 = arith.constant 0 : i32
    %c0_i32_1 = arith.constant 0 : i32
    return %c0_i32, %c0_i32_0 : i32, i32
  }
  func.func @transform_25(%arg0: i32) -> (i32, i32) {
    %c0_i32 = arith.constant 0 : i32
    %c0_i32_0 = arith.constant 0 : i32
    %c0_i32_1 = arith.constant 0 : i32
    return %c0_i32, %c0_i32_0 : i32, i32
  }
  func.func @transform_26(%arg0: i32) -> (i32, i32) {
    %c0_i32 = arith.constant 0 : i32
    %c0_i32_0 = arith.constant 0 : i32
    %c0_i32_1 = arith.constant 0 : i32
    return %c0_i32, %c0_i32_0 : i32, i32
  }
  func.func @transform_27(%arg0: i32) -> (i32, i32, i32) {
    %c0_i32 = arith.constant 0 : i32
    %c0_i32_0 = arith.constant 0 : i32
    %c0_i32_1 = arith.constant 0 : i32
    return %arg0, %c0_i32, %c0_i32_0 : i32, i32, i32
  }
}

</mosaic_0001>

<bundles_post_ra>
// kernel: clip_lp_forward.1
= control target key start
LH: loop header
LB: loop body
LE: loop exit
PB: predicated region body
PF: predicated region fallthrough
CT: control target
= control target key end

     0   :  { %s5732_s0 = inlined_call_operand.vmem [shape: f32[2,4,768], index: 0, kind: input, shape index: {}]   ;;  %s5733_s1 = inlined_call_operand.vmem [shape: f32[768,32], index: 1, kind: input, shape index: {}]   ;;  %s5734_s2 = inlined_call_operand.vmem [shape: f32[1,32], index: 2, kind: input, shape index: {}]   ;;  %s5735_s3 = inlined_call_operand.vmem [shape: f32[5,32], index: 3, kind: input, shape index: {}]   ;;  %s5736_s4 = inlined_call_operand.vmem [shape: f32[1,32], index: 4, kind: input, shape index: {}]   ;;  %s5737_s5 = inlined_call_operand.vmem [shape: f32[1,32], index: 5, kind: input, shape index: {}]   ;;  %s5738_s6 = inlined_call_operand.vmem [shape: f32[2,1,32], index: 6, kind: input, shape index: {}]   ;;  %s5739_s7 = inlined_call_operand.vmem [shape: f32[2,1,32], index: 7, kind: input, shape index: {}]   ;;  %s5740_s8 = inlined_call_operand.vmem [shape: f32[8,32,8], index: 8, kind: input, shape index: {}]   ;;  %s5741_s9 = inlined_call_operand.vmem [shape: f32[8,1,8], index: 9, kind: input, shape index: {}]   ;;  %s5742_s10 = inlined_call_operand.vmem [shape: f32[8,32,8], index: 10, kind: input, shape index: {}]   ;;  %s5743_s11 = inlined_call_operand.vmem [shape: f32[8,1,8], index: 11, kind: input, shape index: {}]   ;;  %s5744_s12 = inlined_call_operand.vmem [shape: f32[8,32,8], index: 12, kind: input, shape index: {}]   ;;  %s5745_s13 = inlined_call_operand.vmem [shape: f32[8,1,8], index: 13, kind: input, shape index: {}]   ;;  %s5746_s14 = inlined_call_operand.vmem [shape: f32[8,8,32], index: 14, kind: input, shape index: {}]   ;;  %s5747_s15 = inlined_call_operand.vmem [shape: f32[2,1,32], index: 15, kind: input, shape index: {}]   ;;  %s5748_s16 = inlined_call_operand.vmem [shape: f32[2,1,32], index: 16, kind: input, shape index: {}]   ;;  %s5749_s17 = inlined_call_operand.vmem [shape: f32[2,1,32], index: 17, kind: input, shape index: {}]   ;;  %s5750_s18 = inlined_call_operand.vmem [shape: f32[2,32,128], index: 18, kind: input, shape index: {}]   ;;  %s5751_s19 = inlined_call_operand.vmem [shape: f32[2,1,128], index: 19, kind: input, shape index: {}]   ;;  %s5752_s20 = inlined_call_operand.vmem [shape: f32[2,128,32], index: 20, kind: input, shape index: {}]   ;;  %s5753_s21 = inlined_call_operand.vmem [shape: f32[2,1,32], index: 21, kind: input, shape index: {}]   ;;  %s5754_s22 = inlined_call_operand.vmem [shape: f32[1,32], index: 22, kind: input, shape index: {}]   ;;  %s5755_s23 = inlined_call_operand.vmem [shape: f32[1,32], index: 23, kind: input, shape index: {}]   ;;  %s5756_s24 = inlined_call_operand.vmem [shape: f32[32,16], index: 24, kind: input, shape index: {}]   ;;  %s5757_s25 = inlined_call_operand.vmem [shape: f32[16,128], index: 25, kind: input, shape index: {}]   ;;  %s5758_s26 = inlined_call_operand.vmem [shape: f32[1,128], index: 26, kind: input, shape index: {}]   ;;  %s5759_s27 = inlined_call_operand.hbm [shape: f32[2,1,128], index: 27, kind: output, shape index: {}]  }
   0x1   :  { %5772 = sst [smem:[#allocation14_spill]] %s5732_s0 }
   0x2   :  { %5773 = sst [smem:[#allocation15_spill]] %s5733_s1 }
   0x3   :  { %5774 = sst [smem:[#allocation16_spill]] %s5734_s2 }
   0x4   :  { %5775 = sst [smem:[#allocation17_spill]] %s5735_s3 }
   0x5   :  { %5776 = sst [smem:[#allocation18_spill]] %s5736_s4 }
   0x6   :  { %5777 = sst [smem:[#allocation19_spill]] %s5737_s5 }
   0x7   :  { %5778 = sst [smem:[#allocation20_spill]] %s5738_s6 }
   0x8   :  { %5779 = sst [smem:[#allocation21_spill]] %s5739_s7 }
   0x9   :  { %5780 = sst [smem:[#allocation22_spill]] %s5740_s8 }
   0xa   :  { %5781 = sst [smem:[#allocation23_spill]] %s5741_s9 }
   0xb   :  { %5782 = sst [smem:[#allocation24_spill]] %s5742_s10 }
   0xc   :  { %5783 = sst [smem:[#allocation25_spill]] %s5743_s11 }
   0xd   :  { %5784 = sst [smem:[#allocation26_spill]] %s5758_s26 }
   0xe   :  { %5785 = sst [smem:[#allocation27_spill]] %s5759_s27 }
   0xf   :  { %32 = vsyncpa [#allocation4], 0 }
  0x10   :  { %34 = vsyncpa [#allocation4 + $0x1], 0  ;;  %s4934_s7 = smov 0   ;;  %s4936_s4 = smov 0  }
  0x11   :  { %s4938_s8 = smov 0   ;;  %s4940_s30 = smov 0  }
  0x12 LB: > { %5786 = sst [smem:[#allocation6_spill]] %s4765_s7  ;;  %s4955_s9 = sadd.s32 4294967295, %s4777_s30   ;;  %s4777_s30 = sphi %s4940_s30, %s5818_s30   ;;  %s4773_s8 = sphi %s4938_s8, %s5821_s8   ;;  %s4769_s4 = sphi %s4936_s4, %s5820_s4   ;;  %s4765_s7 = sphi %s4934_s7, %s5819_s7  }
  0x13   : > { %5787 = sst [smem:[#allocation7_spill]] %s4769_s4  ;;  %s3767_s5 = sadd.s32 4294967294, %s4777_s30  }
  0x14   : > { %5788 = sst [smem:[#allocation8_spill]] %s4773_s8  ;;  %s4959_s28 = sadd.s32 1, %s4777_s30  }
  0x15   : > { %5789 = sst [smem:[#allocation9_spill]] %s4777_s30  ;;  %s619_s0 = sadd.s32 1, %s4773_s8 }
  0x16   : > { %5790 = sst [smem:[#allocation10_spill]] %s4959_s28  ;;  %s616_s10 = ssub.s32 %s4777_s30, %s4959_s28 }
  0x17   : > { %p629_p0 = scmp.ne.s32.totalorder %s4773_s8, %s4769_s4  ;;  %p617_p1 = scmp.eq.s32.totalorder %s616_s10, 0 }
  0x18   : > { %p630_p2 = scmp.eq.s32.totalorder %s4955_s9, 1  ;;  %p635_p3 = scmp.ne.s32.totalorder %s4769_s4, %s4765_s7 }
  0x19   : > { %p636_p4 = scmp.eq.s32.totalorder %s3767_s5, 1  ;;  %p3770_p7 = scmp.ge.s32.totalorder %s4777_s30, 1 }
  0x1a   : > { %s4970_s29 = scalar_select %p617_p1, %s4773_s8, %s619_s0  }
  0x1b   : > { %p4972_p5 = por %p630_p2, %p629_p0  ;;  %p4976_p6 = por %p636_p4, %p635_p3 }
  0x1c   : > { %5791 = sst [smem:[#allocation11_spill]] %s4970_s29  ;;  %p740_p8 = scmp.lt.s32.totalorder %s4777_s30, 3 }
  0x1d   : > { %s5792_s1 = scalar_select %p4972_p5, 1, 0 }
  0x1e   : > { %s5794_s6 = scalar_select %p4976_p6, 1, 0 }
  0x1f   : > { %5793 = sst [smem:[#allocation12_spill]] %s5792_s1  ;;  %p741_p9 = pnand %p3770_p7, %p740_p8 }
  0x20   : > { %5795 = sst [smem:[#allocation13_spill]] %s5794_s6  ;;  %s5796_s10 = sld [smem:[#allocation15_spill]] (!%p741_p9)  ;;  %vm1135_vm0 = vcmask (!%p741_p9), 253952   ;;  %vm1137_vm1 = vcmask (!%p741_p9), 257024   ;;  %vm1144_vm2 = vcmask (!%p741_p9), 258048  }
  0x21   : > { %744 = sbr.rel (%p741_p9) target bundleno = 6341 (0x18c5), region = 128  ;;  %p811_p10 = scmp.lt.s32.totalorder (!%p741_p9), %s4955_s9, 1 }
  0x22   : > { %s5798_s5 = sld [smem:[#allocation16_spill]] (!%p741_p9)  ;;  %s5799_s29 = sld [smem:[#allocation17_spill]] (!%p741_p9) }
  0x23   : > { %s5801_s7 = sld [smem:[#allocation19_spill]] (!%p741_p9)  ;;  %s5802_s30 = sand.u32 (!%p741_p9), 1, %s4769_s4  }
  0x24   : > { %s5303_s0 = scalar_lea.vmem (!%p741_p9), [#allocation3], %s5802_s30  ;;  %s5307_s3 = smov (!%p741_p9), 0  }
  0x26   : > { %v835_v0 = vld [vmem:[%s5796_s10 + $0x80] sm:$0xff] (!%p741_p9)  ;;  %v836_v1 = vld [vmem:[%s5796_s10 + $0x88] sm:$0xff] (!%p741_p9)  ;;  %v837_v11 = vld [vmem:[%s5796_s10 + $0x90] sm:$0xff] (!%p741_p9) }
  0x27   : > { %v867_v2 = vld [vmem:[%s5796_s10 + $0x180] sm:$0xff] (!%p741_p9)  ;;  %v4407_v3 = vpack.c.bf16 (!%p741_p9), %v836_v1, %v835_v0  ;;  %v868_v4 = vld [vmem:[%s5796_s10 + $0x188] sm:$0xff] (!%p741_p9)  ;;  %v838_v13 = vld [vmem:[%s5796_s10 + $0x98] sm:$0xff] (!%p741_p9) }
  0x28   : > { %v819_v5 = vld [vmem:[%s5796_s10] sm:$0xff]  ;;  %v820_v6 = vld [vmem:[%s5796_s10 + $0x8] sm:$0xff]  ;;  %v4439_v7 = vpack.c.bf16 %v868_v4, %v867_v2  ;;  %v869_v14 = vld [vmem:[%s5796_s10 + $0x190] sm:$0xff]  ;;  %v4411_v16 = vpack.c.bf16 %v838_v13, %v837_v11  ;;  %s5086_s2 = scalar_select %p811_p10, %s4955_s9, 1 }
  0x29   : > { %v4409_v8 = vpack.c.bf16 %v820_v6, %v819_v5  ;;  %v851_v9 = vld [vmem:[%s5796_s10 + $0x100] sm:$0xff]  ;;  %v852_v10 = vld [vmem:[%s5796_s10 + $0x108] sm:$0xff]  ;;  %4408 = vmatprep.subr.bf16.mxu0 %v4407_v3  ;;  %v870_v15 = vld [vmem:[%s5796_s10 + $0x198] sm:$0xff] }
  0x2a   : > { %v4441_v12 = vpack.c.bf16 %v852_v10, %v851_v9  ;;  %4440 = vmatprep.subr.bf16.mxu1 %v4439_v7  ;;  %v4443_v17 = vpack.c.bf16 %v870_v15, %v869_v14  ;;  %v821_v18 = vld [vmem:[%s5796_s10 + $0x10] sm:$0xff]  ;;  %v822_v19 = vld [vmem:[%s5796_s10 + $0x18] sm:$0xff]  ;;  %v839_v23 = vld [vmem:[%s5796_s10 + $0xa0] sm:$0xff]  ;;  %s4614_s11 = smul.u32 24, %s5086_s2  ;;  %s5797_s2 = sld [smem:[#allocation14_spill]] }
  0x2b   : > { %4410 = vmatpush3.bf16.msra.mxu0 %v4409_v8  ;;  %v853_v20 = vld [vmem:[%s5796_s10 + $0x110] sm:$0xff]  ;;  %v4413_v21 = vpack.c.bf16 %v822_v19, %v821_v18  ;;  %v854_v22 = vld [vmem:[%s5796_s10 + $0x118] sm:$0xff]  ;;  %v840_v24 = vld [vmem:[%s5796_s10 + $0xa8] sm:$0xff] }
  0x2c   : > { %4442 = vmatpush3.bf16.msra.mxu1 %v4441_v12  ;;  %4412 = vmatprep.subr.bf16.mxu0 %v4411_v16  ;;  %v4445_v25 = vpack.c.bf16 %v854_v22, %v853_v20  ;;  %v4415_v26 = vpack.c.bf16 %v840_v24, %v839_v23  ;;  %v871_v27 = vld [vmem:[%s5796_s10 + $0x1a0] sm:$0xff]  ;;  %v872_v28 = vld [vmem:[%s5796_s10 + $0x1a8] sm:$0xff]  ;;  %v841_v35 = vld [vmem:[%s5796_s10 + $0xb0] sm:$0xff] }
  0x2d   : > { %4444 = vmatprep.subr.bf16.mxu1 %v4443_v17  ;;  %v823_v29 = vld [vmem:[%s5796_s10 + $0x20] sm:$0xff]  ;;  %v4447_v30 = vpack.c.bf16 %v872_v28, %v871_v27  ;;  %v824_v31 = vld [vmem:[%s5796_s10 + $0x28] sm:$0xff]  ;;  %v842_v36 = vld [vmem:[%s5796_s10 + $0xb8] sm:$0xff] }
  0x2e   : > { %v855_v32 = vld [vmem:[%s5796_s10 + $0x120] sm:$0xff]  ;;  %v856_v33 = vld [vmem:[%s5796_s10 + $0x128] sm:$0xff]  ;;  %v4417_v34 = vpack.c.bf16 %v824_v31, %v823_v29  ;;  %v873_v37 = vld [vmem:[%s5796_s10 + $0x1b0] sm:$0xff]  ;;  %v4419_v39 = vpack.c.bf16 %v842_v36, %v841_v35 }
  0x2f   : > { %4414 = vmatpush3.bf16.msra.mxu0 %v4413_v21  ;;  %v4449_v38 = vpack.c.bf16 %v856_v33, %v855_v32  ;;  %v874_v40 = vld [vmem:[%s5796_s10 + $0x1b8] sm:$0xff]  ;;  %v825_v41 = vld [vmem:[%s5796_s10 + $0x30] sm:$0xff]  ;;  %v843_v46 = vld [vmem:[%s5796_s10 + $0xc0] sm:$0xff] }
  0x30   : > { %4446 = vmatpush3.bf16.msra.mxu1 %v4445_v25  ;;  %4416 = vmatprep.subr.bf16.mxu0 %v4415_v26  ;;  %v826_v42 = vld [vmem:[%s5796_s10 + $0x38] sm:$0xff]  ;;  %v4451_v43 = vpack.c.bf16 %v874_v40, %v873_v37  ;;  %v857_v44 = vld [vmem:[%s5796_s10 + $0x130] sm:$0xff]  ;;  %v844_v47 = vld [vmem:[%s5796_s10 + $0xc8] sm:$0xff]  ;;  %s5143_s26 = scalar_lea.vmem %s5797_s2, %s4614_s11 }
  0x31   : > { %4448 = vmatprep.subr.bf16.mxu1 %v4447_v30  ;;  %v858_v45 = vld [vmem:[%s5796_s10 + $0x138] sm:$0xff]  ;;  %v875_v48 = vld [vmem:[%s5796_s10 + $0x1c0] sm:$0xff]  ;;  %v876_v49 = vld [vmem:[%s5796_s10 + $0x1c8] sm:$0xff]  ;;  %v4421_v50 = vpack.c.bf16 %v826_v42, %v825_v41  ;;  %v4423_v52 = vpack.c.bf16 %v844_v47, %v843_v46 }
  0x32   : > { %v4453_v51 = vpack.c.bf16 %v858_v45, %v857_v44  ;;  %v827_v53 = vld [vmem:[%s5796_s10 + $0x40] sm:$0xff]  ;;  %v828_v54 = vld [vmem:[%s5796_s10 + $0x48] sm:$0xff]  ;;  %v4455_v56 = vpack.c.bf16 %v876_v49, %v875_v48  ;;  %v845_v58 = vld [vmem:[%s5796_s10 + $0xd0] sm:$0xff] }
  0x33   : > { %4418 = vmatpush3.bf16.msra.mxu0 %v4417_v34  ;;  %v859_v55 = vld [vmem:[%s5796_s10 + $0x140] sm:$0xff]  ;;  %v860_v57 = vld [vmem:[%s5796_s10 + $0x148] sm:$0xff]  ;;  %v846_v59 = vld [vmem:[%s5796_s10 + $0xd8] sm:$0xff]  ;;  %v4425_v62 = vpack.c.bf16 %v828_v54, %v827_v53 }
  0x34   : > { %4450 = vmatpush3.bf16.msra.mxu1 %v4449_v38  ;;  %4420 = vmatprep.subr.bf16.mxu0 %v4419_v39  ;;  %v877_v60 = vld [vmem:[%s5796_s10 + $0x1d0] sm:$0xff]  ;;  %v878_v61 = vld [vmem:[%s5796_s10 + $0x1d8] sm:$0xff]  ;;  %v4457_v63 = vpack.c.bf16 %v860_v57, %v859_v55  ;;  %v4427_v0 = vpack.c.bf16 %v846_v59, %v845_v58  ;;  %v847_v6 = vld [vmem:[%s5796_s10 + $0xe0] sm:$0xff] }
  0x35   : > { %4452 = vmatprep.subr.bf16.mxu1 %v4451_v43  ;;  %v829_v1 = vld [vmem:[%s5796_s10 + $0x50] sm:$0xff]  ;;  %v830_v2 = vld [vmem:[%s5796_s10 + $0x58] sm:$0xff]  ;;  %v4459_v4 = vpack.c.bf16 %v878_v61, %v877_v60  ;;  %v848_v7 = vld [vmem:[%s5796_s10 + $0xe8] sm:$0xff] }
  0x36   : > { %v861_v3 = vld [vmem:[%s5796_s10 + $0x150] sm:$0xff]  ;;  %v862_v5 = vld [vmem:[%s5796_s10 + $0x158] sm:$0xff]  ;;  %v879_v8 = vld [vmem:[%s5796_s10 + $0x1e0] sm:$0xff]  ;;  %v4429_v10 = vpack.c.bf16 %v830_v2, %v829_v1  ;;  %v4431_v14 = vpack.c.bf16 %v848_v7, %v847_v6 }
  0x37   : > { %4422 = vmatpush3.bf16.msra.mxu0 %v4421_v50  ;;  %v880_v9 = vld [vmem:[%s5796_s10 + $0x1e8] sm:$0xff]  ;;  %v831_v11 = vld [vmem:[%s5796_s10 + $0x60] sm:$0xff]  ;;  %v4461_v13 = vpack.c.bf16 %v862_v5, %v861_v3  ;;  %v849_v20 = vld [vmem:[%s5796_s10 + $0xf0] sm:$0xff] }
  0x38   : > { %4454 = vmatpush3.bf16.msra.mxu1 %v4453_v51  ;;  %4424 = vmatprep.subr.bf16.mxu0 %v4423_v52  ;;  %v832_v12 = vld [vmem:[%s5796_s10 + $0x68] sm:$0xff]  ;;  %v863_v15 = vld [vmem:[%s5796_s10 + $0x160] sm:$0xff]  ;;  %v4463_v18 = vpack.c.bf16 %v880_v9, %v879_v8  ;;  %v850_v21 = vld [vmem:[%s5796_s10 + $0xf8] sm:$0xff] }
  0x39   : > { %4456 = vmatprep.subr.bf16.mxu1 %v4455_v56  ;;  %v816_v16 = vld [vmem:[%s5143_s26] sm:$0xff]  ;;  %v817_v17 = vld [vmem:[%s5143_s26 + $0x8] sm:$0xff]  ;;  %v881_v24 = vld [vmem:[%s5796_s10 + $0x1f0] sm:$0xff]  ;;  %v4433_v26 = vpack.c.bf16 %v832_v12, %v831_v11  ;;  %v4435_v28 = vpack.c.bf16 %v850_v21, %v849_v20 }
  0x3a   : > { %v864_v19 = vld [vmem:[%s5796_s10 + $0x168] sm:$0xff]  ;;  %v918_v22 = vcombine.high %v816_v16, %v816_v16  ;;  %v919_v23 = vcombine.high %v817_v17, %v817_v17  ;;  %v882_v25 = vld [vmem:[%s5796_s10 + $0x1f8] sm:$0xff]  ;;  %v833_v29 = vld [vmem:[%s5796_s10 + $0x70] sm:$0xff] }
  0x3b   : > { %4426 = vmatpush3.bf16.msra.mxu0 %v4425_v62  ;;  %v4465_v27 = vpack.c.bf16 %v864_v19, %v863_v15  ;;  %v834_v30 = vld [vmem:[%s5796_s10 + $0x78] sm:$0xff]  ;;  %v865_v31 = vld [vmem:[%s5796_s10 + $0x170] sm:$0xff]  ;;  %v4467_v32 = vpack.c.bf16 %v882_v25, %v881_v24  ;;  %v899_v34 = vld [vmem:[%s5796_s10 + $0x280] sm:$0xff] }
  0x3c   : > { %4458 = vmatpush3.bf16.msra.mxu1 %v4457_v63  ;;  %4428 = vmatprep.subr.bf16.mxu0 %v4427_v0  ;;  %v866_v33 = vld [vmem:[%s5796_s10 + $0x178] sm:$0xff]  ;;  %v900_v35 = vld [vmem:[%s5796_s10 + $0x288] sm:$0xff]  ;;  %v4437_v36 = vpack.c.bf16 %v834_v30, %v833_v29  ;;  %v883_v39 = vld [vmem:[%s5796_s10 + $0x200] sm:$0xff] }
  0x3d   : > { %4460 = vmatprep.subr.bf16.mxu1 %v4459_v4  ;;  %988 = vmatprep.mubr.f32.mxu0 %v918_v22  ;;  %v4469_v37 = vpack.c.bf16 %v866_v33, %v865_v31  ;;  %v4471_v38 = vpack.c.bf16 %v900_v35, %v899_v34  ;;  %v884_v40 = vld [vmem:[%s5796_s10 + $0x208] sm:$0xff]  ;;  %v901_v41 = vld [vmem:[%s5796_s10 + $0x290] sm:$0xff]  ;;  %v902_v42 = vld [vmem:[%s5796_s10 + $0x298] sm:$0xff] }
  0x3e   : > { %1058 = vmatprep.mubr.f32.mxu1 %v919_v23  ;;  %v4473_v43 = vpack.c.bf16 %v884_v40, %v883_v39  ;;  %v818_v44 = vld [vmem:[%s5143_s26 + $0x10] sm:$0xff]  ;;  %v4475_v45 = vpack.c.bf16 %v902_v42, %v901_v41  ;;  %v886_v47 = vld [vmem:[%s5796_s10 + $0x218] sm:$0xff]  ;;  %v903_v49 = vld [vmem:[%s5796_s10 + $0x2a0] sm:$0xff]  ;;  %s5800_s26 = sld [smem:[#allocation18_spill]] }
  0x3f   : > { %4430 = vmatpush3.bf16.msra.mxu0 %v4429_v10  ;;  %v885_v46 = vld [vmem:[%s5796_s10 + $0x210] sm:$0xff]  ;;  %v920_v48 = vcombine.high %v818_v44, %v818_v44  ;;  %v904_v50 = vld [vmem:[%s5796_s10 + $0x2a8] sm:$0xff]  ;;  %v887_v53 = vld [vmem:[%s5796_s10 + $0x220] sm:$0xff] }
  0x40   : > { %4462 = vmatpush3.bf16.msra.mxu1 %v4461_v13  ;;  %4432 = vmatprep.subr.bf16.mxu0 %v4431_v14  ;;  %v4477_v51 = vpack.c.bf16 %v886_v47, %v885_v46  ;;  %v4479_v52 = vpack.c.bf16 %v904_v50, %v903_v49  ;;  %v888_v54 = vld [vmem:[%s5796_s10 + $0x228] sm:$0xff]  ;;  %v905_v55 = vld [vmem:[%s5796_s10 + $0x2b0] sm:$0xff]  ;;  %v906_v56 = vld [vmem:[%s5796_s10 + $0x2b8] sm:$0xff] }
  0x41   : > { %4464 = vmatprep.subr.bf16.mxu1 %v4463_v18  ;;  %v4481_v57 = vpack.c.bf16 %v888_v54, %v887_v53  ;;  %v4483_v58 = vpack.c.bf16 %v906_v56, %v905_v55  ;;  %v889_v59 = vld [vmem:[%s5796_s10 + $0x230] sm:$0xff]  ;;  %v890_v60 = vld [vmem:[%s5796_s10 + $0x238] sm:$0xff]  ;;  %v907_v61 = vld [vmem:[%s5796_s10 + $0x2c0] sm:$0xff] }
  0x42   : > { %v908_v62 = vld [vmem:[%s5796_s10 + $0x2c8] sm:$0xff]  ;;  %v4485_v63 = vpack.c.bf16 %v890_v60, %v889_v59  ;;  %v891_v1 = vld [vmem:[%s5796_s10 + $0x240] sm:$0xff]  ;;  %v909_v3 = vld [vmem:[%s5796_s10 + $0x2d0] sm:$0xff] }
  0x43   : > { %4434 = vmatpush3.bf16.msra.mxu0 %v4433_v26  ;;  %v4487_v0 = vpack.c.bf16 %v908_v62, %v907_v61  ;;  %v892_v2 = vld [vmem:[%s5796_s10 + $0x248] sm:$0xff]  ;;  %v910_v4 = vld [vmem:[%s5796_s10 + $0x2d8] sm:$0xff]  ;;  %v893_v7 = vld [vmem:[%s5796_s10 + $0x250] sm:$0xff] }
  0x44   : > { %4466 = vmatpush3.bf16.msra.mxu1 %v4465_v27  ;;  %4436 = vmatprep.subr.bf16.mxu0 %v4435_v28  ;;  %v4489_v5 = vpack.c.bf16 %v892_v2, %v891_v1  ;;  %v4491_v6 = vpack.c.bf16 %v910_v4, %v909_v3  ;;  %v894_v8 = vld [vmem:[%s5796_s10 + $0x258] sm:$0xff]  ;;  %v911_v9 = vld [vmem:[%s5796_s10 + $0x2e0] sm:$0xff]  ;;  %v912_v10 = vld [vmem:[%s5796_s10 + $0x2e8] sm:$0xff] }
  0x45   : > { %4468 = vmatprep.subr.bf16.mxu1 %v4467_v32  ;;  %v4493_v11 = vpack.c.bf16 %v894_v8, %v893_v7  ;;  %v4495_v12 = vpack.c.bf16 %v912_v10, %v911_v9  ;;  %v895_v13 = vld [vmem:[%s5796_s10 + $0x260] sm:$0xff]  ;;  %v896_v14 = vld [vmem:[%s5796_s10 + $0x268] sm:$0xff]  ;;  %v913_v15 = vld [vmem:[%s5796_s10 + $0x2f0] sm:$0xff] }
  0x46   : > { %v897_v19 = vld [vmem:[%s5796_s10 + $0x270] sm:$0xff]  ;;  %v898_v20 = vld [vmem:[%s5796_s10 + $0x278] sm:$0xff]  ;;  %v1134_v22 = vld [vmem:[%s5798_s5] sm:$0x1] }
  0x47   : > { %4438 = vmatpush3.bf16.msra.mxu0 %v4437_v36  ;;  %v4501_v21 = vpack.c.bf16 %v898_v20, %v897_v19  ;;  %1136 = vst.msk [vmem:[#allocation2] sm:$0x1] %vm1135_vm0, %v1134_v22  ;;  %v1140_v34 = vld [vmem:[%s5799_s29] sm:$0x1f] }
  0x48   : > { %4470 = vmatpush3.bf16.msra.mxu1 %v4469_v37  ;;  %4472 = vmatprep.subr.bf16.mxu0 %v4471_v38  ;;  %v3772_v47 = vld [vmem:[%s5800_s26] ss:$0 sm:$0xff] }
  0x49   : > { %v3773_v49 = vld [vmem:[%s5801_s7] ss:$0 sm:$0xff] }
  0x4a   : > { %989 = vmatmul.mubr.f32.vlgmr.msra.gmra.mrb[0].mxu0 %v816_v16  ;;  %v914_v16 = vld [vmem:[%s5796_s10 + $0x2f8] sm:$0xff] }
  0x4b   : > { %1059 = vmatmul.mubr.f32.vlgmr.msra.gmra.mrb[0].mxu1 %v817_v17  ;;  %4474 = vmatpush3.bf16.msra.mxu0 %v4473_v43  ;;  %v4497_v17 = vpack.c.bf16 %v896_v14, %v895_v13  ;;  %v4499_v18 = vpack.c.bf16 %v914_v16, %v913_v15 }
  0x4c   : > { %4476 = vmatprep.subr.bf16.mxu0 %v4475_v45  ;;  %1128 = vmatprep.mubr.f32.mxu0 %v920_v48 }
  0x4f   : > { %4478 = vmatpush3.bf16.msra.mxu0 %v4477_v51 }
  0x50   : > { %4480 = vmatprep.subr.bf16.mxu0 %v4479_v52 }
  0x53   : > { %4482 = vmatpush3.bf16.msra.mxu0 %v4481_v57 }
  0x54   : > { %4484 = vmatprep.subr.bf16.mxu0 %v4483_v58 }
  0x57   : > { %4486 = vmatpush3.bf16.msra.mxu0 %v4485_v63 }
  0x58   : > { %4488 = vmatprep.subr.bf16.mxu0 %v4487_v0 }
  0x5b   : > { %4490 = vmatpush3.bf16.msra.mxu0 %v4489_v5 }
  0x5c   : > { %4492 = vmatprep.subr.bf16.mxu0 %v4491_v6 }
  0x5f   : > { %4494 = vmatpush3.bf16.msra.mxu0 %v4493_v11 }
  0x60   : > { %4496 = vmatprep.subr.bf16.mxu0 %v4495_v12 }
  0x63   : > { %4498 = vmatpush3.bf16.msra.mxu0 %v4497_v17 }
  0x64   : > { %4500 = vmatprep.subr.bf16.mxu0 %v4499_v18 }
  0x67   : > { %4502 = vmatpush3.bf16.msra.mxu0 %v4501_v21 }
  0x6a   : > { %1129 = vmatmul.mubr.f32.vlgmr.msra.gmra.mrb[2].mxu0 %v818_v44 }
 0x11d   : > { %v3964_v23 = vpop.f32.mrb[0].mxu0 }
 0x11e   : > { %v3999_v24 = vpop.f32.mrb[0].mxu1  ;;  %v3965_v25 = vpop.f32.mrb[1].mxu0 }
 0x11f   : > { %v3966_v26 = vadd.f32 %v3965_v25, %v3964_v23  ;;  %v4000_v27 = vpop.f32.mrb[1].mxu1 }
 0x120   : > { %v4001_v28 = vadd.f32 %v4000_v27, %v3999_v24 }
 0x122   : > { %v1061_v29 = vadd.f32 %v4001_v28, %v3966_v26 }
 0x13d   : > { %v4034_v30 = vpop.f32.mrb[2].mxu0 }
 0x13e   : > { %v4035_v31 = vpop.f32.mrb[3].mxu0 }
 0x13f   : > { %v4036_v32 = vadd.f32 %v4035_v31, %v4034_v30 }
 0x141   : > { %v1131_v33 = vadd.f32 %v4036_v32, %v1061_v29 }
 0x143   : > { %1138 = vst.msk [vmem:[#allocation2 + $0x1] sm:$0xf] %vm1137_vm1, %v1131_v33 }
 0x14a   : > { %v1139_v35 = vld [vmem:[#allocation2] sm:$0x1f] }
 0x14b   : > { %v1141_v36 = vadd.f32 %v1140_v34, %v1139_v35 }
 0x14d   : > { %v1145_v37 = vsel %vm1144_vm2, %v1141_v36, 0.0 }
 0x14e   : > { %1146 = vadd.xlane.f32.xlu0 %v1145_v37 }
 0x1db   : > { %v1147_v38 = vpop.xlane.xlu0 %1146 }
 0x1dc   : > { %v1149_v39 = vmul.f32 0.03125, %v1147_v38 }
 0x1de   : > { %v1150_v40 = vsub.f32 %v1141_v36, %v1149_v39 }
 0x1e0   : > { %v1151_v41 = vmul.f32 %v1150_v40, %v1150_v40 }
 0x1e2   : > { %v1152_v42 = vsel %vm1144_vm2, %v1151_v41, 0.0 }
 0x1e3   : > { %1153 = vadd.xlane.f32.xlu0 %v1152_v42 }
 0x270   : > { %v1154_v43 = vpop.xlane.xlu0 %1153 }
 0x271   : > { %v1155_v44 = vmul.f32 0.03125, %v1154_v43 }
 0x273   : > { %v1156_v45 = vadd.f32 1e-05, %v1155_v44 }
 0x275   : > { %4679 = vrsqrt.f32 %v1156_v45 }
 0x27f   : > { %v4680_v46 = vpop.eup %4679 }
 0x280   : > { %v1158_v48 = vmul.f32 %v4680_v46, %v1150_v40 }
 0x282   : > { %v1165_v50 = vmul.f32 %v3772_v47, %v1158_v48 }
 0x284   : > { %v1172_v51 = vadd.f32 %v3773_v49, %v1165_v50  }
 0x285 LB: >> { %v1185_v52 = vsel %vm1144_vm2, %v4781_v51, 0.0  ;;  %s5320_s5 = sshll.u32 %s4785_s3, 7  ;;  %s5803_s29 = sld [smem:[#allocation22_spill]]  ;;  %v4787_v61 = vmov 0.0|0.0   ;;  %vm4788_vm3 = vmmov 0   ;;  %v4789_v1 = vmov 0.0   ;;  %s4785_s3 = sphi %s5307_s3, %s1178_s3   ;;  %v4781_v51 = vphi %v1172_v51, %v5809_v51  }
 0x286   : >> { %1186 = vadd.xlane.f32.xlu0 %v1185_v52  ;;  %4503 = vmatprep.subr.bf16.mxu0 %v4787_v61  ;;  %s5804_s27 = sld [smem:[#allocation20_spill]]  ;;  %s5805_s8 = sld [smem:[#allocation24_spill]]  ;;  %vm1226_vm4 = vcmask 261120   ;;  %vm1467_vm5 = vcmask 64512   ;;  %vm1560_vm6 = vcmask 1044480   ;;  %vm1544_vm7 = vcmask 36864  }
 0x287   : >> { %4159 = vmatprep.mubr.msk.f32.mxu0 %vm4788_vm3, %v4789_v1  ;;  %4189 = vmatprep.subr.mxu1 %v4789_v1  ;;  %s5806_s1 = sld [smem:[#allocation21_spill]]  ;;  %s5364_s26 = scalar_lea.vmem %s5744_s12, %s5320_s5  ;;  %vm1556_vm8 = vcmask 39936  }
 0x288   : >> { %4191 = vmatprep.mubr.msk.f32.mxu1 %vm4788_vm3, %v4789_v1  ;;  %v1385_v17 = vld [vmem:[%s5364_s26] sm:$0xff]  ;;  %v1386_v18 = vld [vmem:[%s5364_s26 + $0x8] sm:$0xff]  ;;  %v1387_v20 = vld [vmem:[%s5364_s26 + $0x10] sm:$0xff]  ;;  %s3197_s30 = scalar_lea.vmem %s5749_s17, %s4785_s3  ;;  %s3339_s10 = scalar_lea.vmem %s5753_s21, %s4785_s3 }
 0x289   : >> { %v4516_v19 = vpack.c.bf16 %v1386_v18, %v1385_v17  ;;  %v1388_v21 = vld [vmem:[%s5364_s26 + $0x18] sm:$0xff]  ;;  %v3811_v40 = vld [vmem:[%s5364_s26 + $0x20] sm:$0xff]  ;;  %v3812_v41 = vld [vmem:[%s5364_s26 + $0x28] sm:$0xff] }
 0x28a   : >> { %v4519_v22 = vpack.c.bf16 %v1388_v21, %v1387_v20  ;;  %v4534_v44 = vpack.c.bf16 %v3812_v41, %v3811_v40  ;;  %v3813_v45 = vld [vmem:[%s5364_s26 + $0x30] sm:$0xff]  ;;  %v3814_v46 = vld [vmem:[%s5364_s26 + $0x38] sm:$0xff] }
 0x28b   : >> { %s5326_s28 = scalar_lea.vmem %s5803_s29, %s5320_s5  ;;  %s5808_s29 = sld [smem:[#allocation25_spill]]  ;;  %v4537_v47 = vpack.c.bf16 %v3814_v46, %v3813_v45 }
 0x28c   : >> { %v1214_v58 = vld [vmem:[%s5326_s28] sm:$0xff]  ;;  %v1215_v59 = vld [vmem:[%s5326_s28 + $0x8] sm:$0xff]  ;;  %v1216_v62 = vld [vmem:[%s5326_s28 + $0x10] sm:$0xff]  ;;  %s1181_s6 = scalar_lea.vmem %s5804_s27, %s4785_s3  ;;  %s5348_s11 = scalar_lea.vmem %s5805_s8, %s5320_s5 }
 0x28d   : >> { %v4504_v60 = vpack.c.bf16 %v1215_v59, %v1214_v58  ;;  %v1217_v63 = vld [vmem:[%s5326_s28 + $0x18] sm:$0xff]  ;;  %s1183_s4 = scalar_lea.vmem %s5806_s1, %s4785_s3  ;;  %v3775_v6 = vld [vmem:[%s1181_s6] ss:$0 sm:$0xff]  ;;  %v1303_v9 = vld [vmem:[%s5348_s11 + $0x8] sm:$0xff]  ;;  %s5807_s6 = sld [smem:[#allocation23_spill]] }
 0x28e   : >> { %v4507_v0 = vpack.c.bf16 %v1217_v63, %v1216_v62  ;;  %v1302_v8 = vld [vmem:[%s5348_s11] sm:$0xff]  ;;  %v1304_v14 = vld [vmem:[%s5348_s11 + $0x10] sm:$0xff]  ;;  %v1305_v15 = vld [vmem:[%s5348_s11 + $0x18] sm:$0xff] }
 0x28f   : >> { %4505 = vmatpush3.bf16.msra.mxu0 %v4504_v60  ;;  %v3776_v10 = vld [vmem:[%s1183_s4] ss:$0 sm:$0xff]  ;;  %v4510_v12 = vpack.c.bf16 %v1303_v9, %v1302_v8  ;;  %v4513_v16 = vpack.c.bf16 %v1305_v15, %v1304_v14  ;;  %s3774_s4 = sshll.u32 %s4785_s3, 2  ;;  %v3792_v30 = vld [vmem:[%s5326_s28 + $0x28] sm:$0xff]  ;;  %v3793_v35 = vld [vmem:[%s5326_s28 + $0x30] sm:$0xff] }
 0x290   : >> { %4506 = vmatprep.subr.bf16.mxu0 %v4787_v61  ;;  %v3791_v29 = vld [vmem:[%s5326_s28 + $0x20] sm:$0xff]  ;;  %s5405_s27 = scalar_lea.vmem %s5745_s13, %s3774_s4  ;;  %v3794_v36 = vld [vmem:[%s5326_s28 + $0x38] sm:$0xff]  ;;  %v3831_v40 = vld [vmem:[%s5326_s28 + $0x48] sm:$0xff] }
 0x291   : >> { %s5395_s2 = scalar_lea.vmem %s5808_s29, %s3774_s4  ;;  %v4522_v33 = vpack.c.bf16 %v3792_v30, %v3791_v29  ;;  %v3782_v37 = vld [vmem:[%s5405_s27] ss:$0 sm:$0xff]  ;;  %v4525_v38 = vpack.c.bf16 %v3794_v36, %v3793_v35  ;;  %v3817_v17 = vld [vmem:[%s5405_s27 + $0x1] ss:$0 sm:$0xff]  ;;  %v3842_v36 = vld [vmem:[%s5348_s11 + $0x50] sm:$0xff] }
 0x292   : >> { %v3780_v26 = vld [vmem:[%s5395_s2] ss:$0 sm:$0xff] }
 0x293   : >> { %4508 = vmatpush3.bf16.msra.mxu0 %v4507_v0  ;;  %s5390_s7 = scalar_lea.vmem %s5807_s6, %s3774_s4  ;;  %v3801_v63 = vld [vmem:[%s5348_s11 + $0x20] sm:$0xff]  ;;  %v3802_v0 = vld [vmem:[%s5348_s11 + $0x28] sm:$0xff]  ;;  %s3919_s4 = sshll.u32 %s4785_s3, 5 }
 0x294   : >> { %4509 = vmatprep.subr.bf16.mxu0 %v4787_v61  ;;  %v3778_v25 = vld [vmem:[%s5390_s7] ss:$0 sm:$0xff]  ;;  %s5465_s8 = scalar_lea.vmem %s5746_s14, %s3919_s4 }
 0x313   : >> { %v1187_v53 = vpop.xlane.xlu0 %1186 }
 0x314   : >> { %v1188_v54 = vmul.f32 0.03125, %v1187_v53 }
 0x316   : >> { %v1189_v55 = vsub.f32 %v4781_v51, %v1188_v54 }
 0x318   : >> { %v1190_v56 = vmul.f32 %v1189_v55, %v1189_v55 }
 0x31a   : >> { %v1191_v57 = vsel %vm1144_vm2, %v1190_v56, 0.0 }
 0x31b   : >> { %1192 = vadd.xlane.f32.xlu0 %v1191_v57 }
 0x3a8   : >> { %v1193_v2 = vpop.xlane.xlu0 %1192 }
 0x3a9   : >> { %v1194_v3 = vmul.f32 0.03125, %v1193_v2 }
 0x3ab   : >> { %v1195_v4 = vadd.f32 1e-05, %v1194_v3  ;;  %v4528_v3 = vpack.c.bf16 %v3802_v0, %v3801_v63  ;;  %v3836_v0 = vld [vmem:[%s5390_s7 + $0x2] ss:$0 sm:$0xff] }
 0x3ad   : >> { %4681 = vrsqrt.f32 %v1195_v4 }
 0x3b7   : >> { %v4682_v5 = vpop.eup %4681 }
 0x3b8   : >> { %v1197_v7 = vmul.f32 %v4682_v5, %v1189_v55  ;;  %v3803_v5 = vld [vmem:[%s5348_s11 + $0x30] sm:$0xff] }
 0x3ba   : >> { %v1204_v11 = vmul.f32 %v3775_v6, %v1197_v7  ;;  %v3804_v6 = vld [vmem:[%s5348_s11 + $0x38] sm:$0xff] }
 0x3bb   : >> { %v4531_v7 = vpack.c.bf16 %v3804_v6, %v3803_v5  ;;  %v3856_v6 = vld [vmem:[%s5405_s27 + $0x2] ss:$0 sm:$0xff] }
 0x3bc   : >> { %v5356_v13 = vadd.f32 %v3776_v10, %v1204_v11  ;;  %v3797_v10 = vld [vmem:[%s5390_s7 + $0x1] ss:$0 sm:$0xff] }
 0x3bd   : >> { %v3807_v11 = vld [vmem:[%s5395_s2 + $0x1] ss:$0 sm:$0xff] }
 0x3be   : >> { %4160 = vmatmul.mubr.msk.f32.vlgmr.msra.gmra.mrb[0].mxu0 %vm1226_vm4, %v5356_v13 }
 0x3bf   : >> { %4511 = vmatpush3.bf16.msra.mxu0 %v4510_v12  ;;  %4170 = vmatprep.mubr.msk.f32.mxu0 %vm4788_vm3, %v4789_v1 }
 0x3c0   : >> { %4512 = vmatprep.subr.bf16.mxu0 %v4787_v61 }
 0x3c3   : >> { %4514 = vmatpush3.bf16.msra.mxu0 %v4513_v16 }
 0x3c4   : >> { %4515 = vmatprep.subr.bf16.mxu0 %v4787_v61 }
 0x3c6   : >> { %4171 = vmatmul.mubr.msk.f32.vlgmr.msra.gmra.mrb[2].mxu0 %vm1226_vm4, %v5356_v13 }
 0x3c7   : >> { %4517 = vmatpush3.bf16.msra.mxu0 %v4516_v19  ;;  %4181 = vmatprep.mubr.msk.f32.mxu0 %vm4788_vm3, %v4789_v1 }
 0x3c8   : >> { %4518 = vmatprep.subr.bf16.mxu0 %v4787_v61 }
 0x3cb   : >> { %4520 = vmatpush3.bf16.msra.mxu0 %v4519_v22 }
 0x3cc   : >> { %4184 = vmatprep.subr.mxu0 %v4789_v1 }
 0x3ce   : >> { %4182 = vmatmul.mubr.msk.f32.vlgmr.msra.gmra.mrb[4].mxu0 %vm1226_vm4, %v5356_v13 }
 0x3cf   : >> { %4186 = vmatprep.mubr.msk.f32.mxu0 %vm4788_vm3, %v4789_v1 }
 0x491   : >> { %v1296_v23 = vpop.f32.mrb[0].mxu0 }
 0x492   : >> { %v4161_v24 = vpop.f32.mrb[1].mxu0  ;;  %v1297_v27 = vadd.f32 %v3778_v25, %v1296_v23 }
 0x494   : >> { %v1300_v34 = vmul.f32 0.35355338, %v1297_v27 }
 0x499   : >> { %v1380_v28 = vpop.f32.mrb[2].mxu0 }
 0x49a   : >> { %v1381_v31 = vadd.f32 %v3780_v26, %v1380_v28  ;;  %v4172_v32 = vpop.f32.mrb[3].mxu0  ;;  %v3825_v28 = vld [vmem:[%s5465_s8 + $0x8] sm:$0xff] }
 0x49b   : >> { %v1636_v32 = vld [vmem:[%s5465_s8] sm:$0xff] }
 0x49c   : >> { %4185 = vmatpush3.xpose.msk.msra.mxu0 %vm1467_vm5, %v1381_v31 }
 0x49d   : >> { %4521 = vmatprep.subr.bf16.mxu0 %v4787_v61 }
 0x49f   : >> { %4187 = vmatmul.mubr.msk.f32.vlgmr.msra.gmra.mrb[6].mxu0 %vm1467_vm5, %v1300_v34  ;;  %v3841_v34 = vld [vmem:[%s5348_s11 + $0x48] sm:$0xff] }
 0x4a0   : >> { %4523 = vmatpush3.bf16.msra.mxu0 %v4522_v33  ;;  %4202 = vmatprep.mubr.msk.f32.mxu0 %vm4788_vm3, %v4789_v1  ;;  %v3840_v33 = vld [vmem:[%s5348_s11 + $0x40] sm:$0xff] }
 0x4a1   : >> { %v1463_v39 = vpop.f32.mrb[4].mxu0  ;;  %4524 = vmatprep.subr.bf16.mxu0 %v4787_v61  ;;  %v4546_v35 = vpack.c.bf16 %v3841_v34, %v3840_v33  ;;  %v3891_v33 = vld [vmem:[%s5364_s26 + $0x78] sm:$0xff] }
 0x4a2   : >> { %v1464_v42 = vadd.f32 %v3782_v37, %v1463_v39  ;;  %v4183_v43 = vpop.f32.mrb[5].mxu0  ;;  %v3843_v37 = vld [vmem:[%s5348_s11 + $0x58] sm:$0xff]  ;;  %v3830_v39 = vld [vmem:[%s5326_s28 + $0x40] sm:$0xff] }
 0x4a3   : >> { %v4540_v41 = vpack.c.bf16 %v3831_v40, %v3830_v39  ;;  %v3833_v43 = vld [vmem:[%s5326_s28 + $0x58] sm:$0xff] }
 0x4a4   : >> { %4190 = vmatpush3.msk.msra.mxu1 %vm1560_vm6, %v1464_v42  ;;  %4526 = vmatpush3.bf16.msra.mxu0 %v4525_v38  ;;  %v4549_v38 = vpack.c.bf16 %v3843_v37, %v3842_v36  ;;  %v3832_v42 = vld [vmem:[%s5326_s28 + $0x50] sm:$0xff]  ;;  %v3879_v36 = vld [vmem:[%s5348_s11 + $0x68] sm:$0xff]  ;;  %v3881_v39 = vld [vmem:[%s5348_s11 + $0x78] sm:$0xff] }
 0x4a5   : >> { %4533 = vmatprep.subr.bf16.mxu0 %v4787_v61  ;;  %4527 = vmatprep.subr.bf16.mxu1 %v4787_v61  ;;  %v4543_v46 = vpack.c.bf16 %v3833_v43, %v3832_v42 }
 0x4a7   : >> { %4203 = vmatmul.mubr.msk.f32.vlgmr.msra.gmra.mrb[8].mxu0 %vm1226_vm4, %v5356_v13 }
 0x4a8   : >> { %4535 = vmatpush3.bf16.msra.mxu0 %v4534_v44  ;;  %4224 = vmatprep.mubr.msk.f32.mxu0 %vm4788_vm3, %v4789_v1 }
 0x4a9   : >> { %4536 = vmatprep.subr.bf16.mxu0 %v4787_v61 }
 0x4ac   : >> { %4538 = vmatpush3.bf16.msra.mxu0 %v4537_v47  ;;  %v3850_v47 = vld [vmem:[%s5364_s26 + $0x40] sm:$0xff] }
 0x4ad   : >> { %4237 = vmatprep.subr.mxu0 %v4789_v1 }
 0x4af   : >> { %4225 = vmatmul.mubr.msk.f32.vlgmr.msra.gmra.mrb[10].mxu0 %vm1226_vm4, %v5356_v13 }
 0x4b0   : >> { %4239 = vmatprep.mubr.msk.f32.mxu0 %vm4788_vm3, %v4789_v1  ;;  %4238 = vmatpush3.msra.mxu0 %v3825_v28 }
 0x4b1   : >> { %4539 = vmatprep.subr.bf16.mxu0 %v4787_v61 }
 0x572   : >> { %v1540_v48 = vpop.f32.mrb[6].mxu0 }
 0x573   : >> { %v4188_v49 = vpop.f32.mrb[7].mxu0  ;;  %v1545_v50 = vsel %vm1544_vm7, %v1540_v48, -inf }
 0x574   : >> { %1546 = vmax.xlane.f32.xlu1 %v1545_v50 }
 0x57a   : >> { %v1718_v52 = vpop.f32.mrb[8].mxu0 }
 0x57b   : >> { %v4204_v53 = vpop.f32.mrb[9].mxu0  ;;  %v1719_v12 = vadd.f32 %v3797_v10, %v1718_v52 }
 0x57c   : >> { %v3852_v53 = vld [vmem:[%s5364_s26 + $0x50] sm:$0xff] }
 0x57d   : >> { %v1722_v18 = vmul.f32 0.35355338, %v1719_v12 }
 0x582   : >> { %v1885_v54 = vpop.f32.mrb[10].mxu0 }
 0x583   : >> { %v4226_v55 = vpop.f32.mrb[11].mxu0  ;;  %v1886_v19 = vadd.f32 %v3817_v17, %v1885_v54  ;;  %v3853_v54 = vld [vmem:[%s5364_s26 + $0x58] sm:$0xff] }
 0x584   : >> { %v3846_v55 = vld [vmem:[%s5395_s2 + $0x2] ss:$0 sm:$0xff] }
 0x601   : >> { %v1547_v56 = vpop.xlane.xlu1 %1546 }
 0x602   : >> { %v1548_v57 = vsub.f32 %v1540_v48, %v1547_v56  ;;  %v3851_v48 = vld [vmem:[%s5364_s26 + $0x48] sm:$0xff]  ;;  %v4555_v56 = vpack.c.bf16 %v3853_v54, %v3852_v53 }
 0x603   : >> { %v4552_v52 = vpack.c.bf16 %v3851_v48, %v3850_v47 }
 0x604   : >> { %v1549_v58 = vmul.f32 1.442695, %v1548_v57 }
 0x606   : >> { %4683 = vpow2.f32 %v1549_v58 }
 0x610   : >> { %v4684_v59 = vpop.eup %4683 }
 0x611   : >> { %v1551_v60 = vsel %vm1544_vm7, %v4684_v59, 0.0 }
 0x612   : >> { %1552 = vadd.xlane.f32.xlu1 %v1551_v60 }
 0x69f   : >> { %v1553_v62 = vpop.xlane.xlu1 %1552 }
 0x6a0   : >> { %4685 = vrcp.f32 %v1553_v62 }
 0x6aa   : >> { %v4686_v2 = vpop.eup %4685 }
 0x6ab   : >> { %v1555_v4 = vmul.f32 %v4686_v2, %v4684_v59 }
 0x6ad   : >> { %4192 = vmatmul.mubr.msk.f32.vlgmr.msra.gmra.mrb[0].mxu1 %vm1556_vm8, %v1555_v4 }
 0x6ae   : >> { %4529 = vmatpush3.bf16.msra.mxu1 %v4528_v3  ;;  %4213 = vmatprep.mubr.msk.f32.mxu1 %vm4788_vm3, %v4789_v1 }
 0x6af   : >> { %4530 = vmatprep.subr.bf16.mxu1 %v4787_v61 }
 0x6b2   : >> { %4532 = vmatpush3.bf16.msra.mxu1 %v4531_v7 }
 0x6b3   : >> { %4227 = vmatprep.subr.mxu1 %v4789_v1 }
 0x6b5   : >> { %4214 = vmatmul.mubr.msk.f32.vlgmr.msra.gmra.mrb[2].mxu1 %vm1226_vm4, %v5356_v13 }
 0x6b6   : >> { %4229 = vmatprep.mubr.msk.f32.mxu1 %vm4788_vm3, %v4789_v1 }
 0x780   : >> { %v1630_v8 = vpop.f32.mrb[0].mxu1 }
 0x781   : >> { %v4193_v9 = vpop.f32.mrb[1].mxu1 }
 0x788   : >> { %v1802_v14 = vpop.f32.mrb[2].mxu1 }
 0x789   : >> { %v1803_v15 = vadd.f32 %v3807_v11, %v1802_v14  ;;  %v4215_v16 = vpop.f32.mrb[3].mxu1 }
 0x78b   : >> { %4228 = vmatpush3.xpose.msk.msra.mxu1 %vm1467_vm5, %v1803_v15 }
 0x78c   : >> { %4232 = vmatprep.subr.mxu1 %v4789_v1 }
 0x78e   : >> { %4230 = vmatmul.mubr.msk.f32.vlgmr.msra.gmra.mrb[4].mxu1 %vm1467_vm5, %v1722_v18 }
 0x78f   : >> { %4233 = vmatpush3.msk.msra.mxu1 %vm1560_vm6, %v1886_v19  ;;  %4234 = vmatprep.mubr.msk.f32.mxu1 %vm4788_vm3, %v4789_v1  ;;  %v3864_v19 = vld [vmem:[%s5465_s8 + $0x10] sm:$0xff] }
 0x790   : >> { %4242 = vmatprep.subr.mxu1 %v4789_v1 }
 0x861   : >> { %v1961_v20 = vpop.f32.mrb[4].mxu1 }
 0x862   : >> { %v4231_v21 = vpop.f32.mrb[5].mxu1  ;;  %v1965_v22 = vsel %vm1544_vm7, %v1961_v20, -inf }
 0x863   : >> { %1966 = vmax.xlane.f32.xlu0 %v1965_v22  ;;  %v3868_v21 = vld [vmem:[%s5326_s28 + $0x60] sm:$0xff]  ;;  %v3869_v22 = vld [vmem:[%s5326_s28 + $0x68] sm:$0xff] }
 0x8f0   : >> { %v1967_v23 = vpop.xlane.xlu0 %1966 }
 0x8f1   : >> { %v1968_v24 = vsub.f32 %v1961_v20, %v1967_v23 }
 0x8f3   : >> { %v1969_v25 = vmul.f32 1.442695, %v1968_v24  ;;  %v4558_v24 = vpack.c.bf16 %v3869_v22, %v3868_v21 }
 0x8f5   : >> { %4687 = vpow2.f32 %v1969_v25 }
 0x8ff   : >> { %v4688_v26 = vpop.eup %4687 }
 0x900   : >> { %v1971_v27 = vsel %vm1544_vm7, %v4688_v26, 0.0 }
 0x901   : >> { %1972 = vadd.xlane.f32.xlu1 %v1971_v27  ;;  %v3871_v27 = vld [vmem:[%s5326_s28 + $0x78] sm:$0xff] }
 0x98e   : >> { %v1973_v29 = vpop.xlane.xlu1 %1972 }
 0x98f   : >> { %4689 = vrcp.f32 %v1973_v29  ;;  %v3888_v29 = vld [vmem:[%s5364_s26 + $0x60] sm:$0xff] }
 0x999   : >> { %v4690_v30 = vpop.eup %4689 }
 0x99a   : >> { %v1975_v31 = vmul.f32 %v4690_v30, %v4688_v26  ;;  %v3870_v26 = vld [vmem:[%s5326_s28 + $0x70] sm:$0xff]  ;;  %v3889_v30 = vld [vmem:[%s5364_s26 + $0x68] sm:$0xff] }
 0x99b   : >> { %v4561_v28 = vpack.c.bf16 %v3871_v27, %v3870_v26 }
 0x99c   : >> { %4235 = vmatmul.mubr.msk.f32.vlgmr.msra.gmra.mrb[6].mxu1 %vm1556_vm8, %v1975_v31  ;;  %v4570_v31 = vpack.c.bf16 %v3889_v30, %v3888_v29 }
 0x99d   : >> { %4243 = vmatpush3.msra.mxu1 %v1636_v32  ;;  %4244 = vmatprep.mubr.msk.f32.mxu1 %vm4788_vm3, %v4789_v1  ;;  %v3890_v32 = vld [vmem:[%s5364_s26 + $0x70] sm:$0xff]  ;;  %s3186_s26 = scalar_lea.vmem %s5747_s15, %s4785_s3 }
 0x99e   : >> { %4545 = vmatprep.subr.bf16.mxu1 %v4787_v61  ;;  %v4573_v34 = vpack.c.bf16 %v3891_v33, %v3890_v32 }
 0x9a0   : >> { %4245 = vmatmul.mubr.msk.f32.vlgmr.msra.gmra.mrb[8].mxu1 %vm1467_vm5, %v1630_v8 }
 0x9a1   : >> { %4547 = vmatpush3.bf16.msra.mxu1 %v4546_v35  ;;  %4266 = vmatprep.mubr.msk.f32.mxu1 %vm4788_vm3, %v4789_v1  ;;  %v3878_v35 = vld [vmem:[%s5348_s11 + $0x60] sm:$0xff] }
 0x9a2   : >> { %4548 = vmatprep.subr.bf16.mxu1 %v4787_v61  ;;  %v4564_v37 = vpack.c.bf16 %v3879_v36, %v3878_v35 }
 0x9a5   : >> { %4550 = vmatpush3.bf16.msra.mxu1 %v4549_v38  ;;  %v3880_v38 = vld [vmem:[%s5348_s11 + $0x70] sm:$0xff]  ;;  %s5613_s11 = scalar_lea.vmem %s5752_s20, %s5320_s5 }
 0x9a6   : >> { %4280 = vmatprep.subr.mxu1 %v4789_v1  ;;  %v4567_v42 = vpack.c.bf16 %v3881_v39, %v3880_v38  ;;  %v3324_v38 = vld [vmem:[%s5613_s11 + $0x8] sm:$0xff] }
 0x9a8   : >> { %4267 = vmatmul.mubr.msk.f32.vlgmr.msra.gmra.mrb[10].mxu1 %vm1226_vm4, %v5356_v13 }
 0x9a9   : >> { %4282 = vmatprep.mubr.msk.f32.mxu1 %vm4788_vm3, %v4789_v1 }
 0xa6f   : >> { %v2048_v44 = vpop.f32.mrb[6].mxu1 }
 0xa70   : >> { %v4236_v45 = vpop.f32.mrb[7].mxu1  ;;  %4240 = vmatmul.mubr.msk.f32.vlgmr.msra.gmra.mrb[12].mxu0 %vm1467_vm5, %v2048_v44 }
 0xa71   : >> { %4541 = vmatpush3.bf16.msra.mxu0 %v4540_v41  ;;  %4255 = vmatprep.mubr.msk.f32.mxu0 %vm4788_vm3, %v4789_v1 }
 0xa72   : >> { %4542 = vmatprep.subr.bf16.mxu0 %v4787_v61 }
 0xa73   : >> { %v2197_v49 = vpop.f32.mrb[8].mxu1 }
 0xa74   : >> { %v4246_v50 = vpop.f32.mrb[9].mxu1 }
 0xa75   : >> { %4544 = vmatpush3.bf16.msra.mxu0 %v4543_v46  ;;  %v3874_v50 = vld [vmem:[%s5390_s7 + $0x3] ss:$0 sm:$0xff]  ;;  %s3232_s7 = scalar_lea.vmem %s5751_s19, %s4785_s3 }
 0xa76   : >> { %4551 = vmatprep.subr.bf16.mxu0 %v4787_v61 }
 0xa78   : >> { %4256 = vmatmul.mubr.msk.f32.vlgmr.msra.gmra.mrb[14].mxu0 %vm1226_vm4, %v5356_v13 }
 0xa79   : >> { %4553 = vmatpush3.bf16.msra.mxu0 %v4552_v52  ;;  %4277 = vmatprep.mubr.msk.f32.mxu0 %vm4788_vm3, %v4789_v1  ;;  %v3884_v52 = vld [vmem:[%s5395_s2 + $0x3] ss:$0 sm:$0xff]  ;;  %s3227_s2 = scalar_lea.vmem %s5750_s18, %s3919_s4 }
 0xa7a   : >> { %4554 = vmatprep.subr.bf16.mxu0 %v4787_v61  ;;  %v3231_v26 = vld [vmem:[%s3227_s2 + $0x18] sm:$0xff] }
 0xa7b   : >> { %v2366_v57 = vpop.f32.mrb[10].mxu1 }
 0xa7c   : >> { %v2367_v58 = vadd.f32 %v3846_v55, %v2366_v57  ;;  %v4268_v59 = vpop.f32.mrb[11].mxu1  ;;  %v3894_v57 = vld [vmem:[%s5405_s27 + $0x3] ss:$0 sm:$0xff]  ;;  %s3195_s27 = scalar_lea.vmem %s5748_s16, %s4785_s3  ;;  %s1178_s3 = sadd.s32 1, %s4785_s3  }
 0xa7d   : >> { %4556 = vmatpush3.bf16.msra.mxu0 %v4555_v56  ;;  %v3905_v32 = vld [vmem:[%s3195_s27] ss:$0 sm:$0xff]  ;;  %p1175_p11 = scmp.ge.s32.totalorder %s1178_s3, 2  }
 0xa7e   : >> { %4281 = vmatpush3.xpose.msk.msra.mxu1 %vm1467_vm5, %v2367_v58  ;;  %4290 = vmatprep.subr.mxu0 %v4789_v1  ;;  %vm4791_vm9 = vmmov (%p1175_p11), 0   ;;  %s5810_s27 = sld [smem:[#allocation7_spill]] (%p1175_p11)  ;;  %vm3516_vm10 = vcmask (%p1175_p11), 130048   ;;  %s3604_s28 = sshll.u32 (%p1175_p11), %s5303_s0, 4  ;;  %s5689_s28 = int_to_ptr.vmem [resolvable:$true] %s3604_s28 }
 0xa7f   : >> { %4285 = vmatprep.subr.mxu1 %v4789_v1 }
 0xa80   : >> { %4278 = vmatmul.mubr.msk.f32.vlgmr.msra.gmra.mrb[16].mxu0 %vm1226_vm4, %v5356_v13 }
 0xa81   : >> { %4292 = vmatprep.mubr.msk.f32.mxu0 %vm4788_vm3, %v4789_v1  ;;  %4291 = vmatpush3.msra.mxu0 %v3864_v19 }
 0xa82   : >> { %4563 = vmatprep.subr.bf16.mxu0 %v4787_v61 }
 0xa84   : > { %s5814_s29 = sand.u32 (%p1175_p11), 1, %s5810_s27  }
 0xb43   : >> { %v2124_v60 = vpop.f32.mrb[12].mxu0 }
 0xb44   : >> { %v5513_v62 = vadd.f32 %v2197_v49, %v2124_v60  ;;  %v4241_v63 = vpop.f32.mrb[13].mxu0 }
 0xb4b   : >> { %v2282_v2 = vpop.f32.mrb[14].mxu0 }
 0xb4c   : >> { %v2283_v3 = vadd.f32 %v3836_v0, %v2282_v2  ;;  %v4257_v4 = vpop.f32.mrb[15].mxu0 }
 0xb4e   : >> { %v2286_v5 = vmul.f32 0.35355338, %v2283_v3 }
 0xb50   : >> { %4283 = vmatmul.mubr.msk.f32.vlgmr.msra.gmra.mrb[12].mxu1 %vm1467_vm5, %v2286_v5  ;;  %v3902_v5 = vld [vmem:[%s5465_s8 + $0x18] sm:$0xff]  ;;  %s3915_s8 = sshll.u32 (%p1175_p11), %s4955_s9, 4  ;;  %s4793_s9 = smov (%p1175_p11), [#allocation3]  }
 0xb51   : >> { %4287 = vmatprep.mubr.msk.f32.mxu1 %vm4788_vm3, %v4789_v1  ;;  %s4711_s1 = sshll.u32 (%p1175_p11), %s4793_s9, 4  ;;  %s4712_s1 = int_to_ptr.vmem [resolvable:$false] %s4711_s1 }
 0xb52   : > { %s4713_s6 = scalar_lea.vmem (%p1175_p11), %s4712_s1, 32  ;;  %p4714_p1 = scmp.lt.s32.totalorder (%p1175_p11), %s5689_s28, %s4712_s1 }
 0xb53   : >> { %v2449_v7 = vpop.f32.mrb[16].mxu0 }
 0xb54   : >> { %v2450_v8 = vadd.f32 %v3856_v6, %v2449_v7  ;;  %v4279_v9 = vpop.f32.mrb[17].mxu0 }
 0xb56   : >> { %4286 = vmatpush3.msk.msra.mxu1 %vm1560_vm6, %v2450_v8 }
 0xb57   : >> { %4557 = vmatprep.subr.bf16.mxu1 %v4787_v61 }
 0xc23   : >> { %v2525_v10 = vpop.f32.mrb[12].mxu1 }
 0xc24   : >> { %v4284_v11 = vpop.f32.mrb[13].mxu1  ;;  %v2529_v12 = vsel %vm1544_vm7, %v2525_v10, -inf }
 0xc25   : >> { %2530 = vmax.xlane.f32.xlu0 %v2529_v12 }
 0xcb2   : >> { %v2531_v14 = vpop.xlane.xlu0 %2530 }
 0xcb3   : >> { %v2532_v15 = vsub.f32 %v2525_v10, %v2531_v14 }
 0xcb5   : >> { %v2533_v16 = vmul.f32 1.442695, %v2532_v15  ;;  %v3904_v15 = vld [vmem:[%s3186_s26] ss:$0 sm:$0xff]  ;;  %s5813_s26 = sld [smem:[#allocation27_spill]] (%p1175_p11) }
 0xcb7   : >> { %4691 = vpow2.f32 %v2533_v16 }
 0xcc1   : >> { %v4692_v17 = vpop.eup %4691 }
 0xcc2   : >> { %v2535_v18 = vsel %vm1544_vm7, %v4692_v17, 0.0 }
 0xcc3   : >> { %2536 = vadd.xlane.f32.xlu1 %v2535_v18 }
 0xd50   : >> { %v2537_v20 = vpop.xlane.xlu1 %2536 }
 0xd51   : >> { %4693 = vrcp.f32 %v2537_v20 }
 0xd5b   : >> { %v4694_v23 = vpop.eup %4693 }
 0xd5c   : >> { %v2539_v25 = vmul.f32 %v4694_v23, %v4692_v17  ;;  %v3229_v23 = vld [vmem:[%s3227_s2 + $0x8] sm:$0xff] }
 0xd5e   : >> { %4288 = vmatmul.mubr.msk.f32.vlgmr.msra.gmra.mrb[14].mxu1 %vm1556_vm8, %v2539_v25  ;;  %v3230_v25 = vld [vmem:[%s3227_s2 + $0x10] sm:$0xff] }
 0xd5f   : >> { %4559 = vmatpush3.bf16.msra.mxu1 %v4558_v24  ;;  %4303 = vmatprep.mubr.msk.f32.mxu1 %vm4788_vm3, %v4789_v1  ;;  %v4579_v27 = vpack.c.bf16 %v3231_v26, %v3230_v25  ;;  %v3513_v26 = vld [vmem:[%s5757_s25] sm:$0xff] (%p1175_p11) }
 0xd60   : >> { %4560 = vmatprep.subr.bf16.mxu1 %v4787_v61 }
 0xd63   : >> { %4562 = vmatpush3.bf16.msra.mxu1 %v4561_v28 }
 0xd64   : >> { %4569 = vmatprep.subr.bf16.mxu1 %v4787_v61 }
 0xd66   : >> { %4304 = vmatmul.mubr.msk.f32.vlgmr.msra.gmra.mrb[16].mxu1 %vm1226_vm4, %v5356_v13 }
 0xd67   : >> { %4571 = vmatpush3.bf16.msra.mxu1 %v4570_v31  ;;  %4325 = vmatprep.mubr.msk.f32.mxu1 %vm4788_vm3, %v4789_v1 }
 0xd68   : >> { %4572 = vmatprep.subr.bf16.mxu1 %v4787_v61 }
 0xd6b   : >> { %4574 = vmatpush3.bf16.msra.mxu1 %v4573_v34  ;;  %v3906_v34 = vld [vmem:[%s3197_s30] ss:$0 sm:$0xff]  ;;  %s5812_s30 = sld [smem:[#allocation26_spill]] (%p1175_p11) }
 0xd6c   : >> { %4338 = vmatprep.subr.mxu1 %v4789_v1 }
 0xd6e   : >> { %4326 = vmatmul.mubr.msk.f32.vlgmr.msra.gmra.mrb[18].mxu1 %vm1226_vm4, %v5356_v13 }
 0xd6f   : >> { %4340 = vmatprep.mubr.msk.f32.mxu1 %vm4788_vm3, %v4789_v1  ;;  %4339 = vmatpush3.msra.mxu1 %v3902_v5 }
 0xd70   : >> { %4581 = vmatprep.subr.bf16.mxu1 %v4787_v61 }
 0xe31   : >> { %v2612_v40 = vpop.f32.mrb[14].mxu1 }
 0xe32   : >> { %v4289_v41 = vpop.f32.mrb[15].mxu1  ;;  %4293 = vmatmul.mubr.msk.f32.vlgmr.msra.gmra.mrb[18].mxu0 %vm1467_vm5, %v2612_v40  ;;  %v3325_v40 = vld [vmem:[%s5613_s11 + $0x10] sm:$0xff] }
 0xe33   : >> { %4565 = vmatpush3.bf16.msra.mxu0 %v4564_v37  ;;  %4314 = vmatprep.mubr.msk.f32.mxu0 %vm4788_vm3, %v4789_v1  ;;  %v3323_v37 = vld [vmem:[%s5613_s11] sm:$0xff]  ;;  %v3326_v41 = vld [vmem:[%s5613_s11 + $0x18] sm:$0xff] }
 0xe34   : >> { %4566 = vmatprep.subr.bf16.mxu0 %v4787_v61  ;;  %v4582_v39 = vpack.c.bf16 %v3324_v38, %v3323_v37 }
 0xe37   : >> { %4568 = vmatpush3.bf16.msra.mxu0 %v4567_v42  ;;  %v4585_v42 = vpack.c.bf16 %v3326_v41, %v3325_v40  ;;  %v3515_v40 = vld [vmem:[%s5812_s30] sm:$0x1] (%p1175_p11) }
 0xe38   : >> { %4328 = vmatprep.subr.mxu0 %v4789_v1 }
 0xe39   : >> { %v2774_v43 = vpop.f32.mrb[16].mxu1 }
 0xe3a   : >> { %v4305_v44 = vpop.f32.mrb[17].mxu1  ;;  %4315 = vmatmul.mubr.msk.f32.vlgmr.msra.gmra.mrb[20].mxu0 %vm1226_vm4, %v5356_v13  ;;  %v2775_v53 = vadd.f32 %v3874_v50, %v2774_v43  ;;  %v3327_v43 = vld [vmem:[%s5613_s11 + $0x20] sm:$0xff]  ;;  %v3332_v50 = vld [vmem:[%s5613_s11 + $0x48] sm:$0xff] }
 0xe3b   : >> { %4330 = vmatprep.mubr.msk.f32.mxu0 %vm4788_vm3, %v4789_v1  ;;  %v3328_v44 = vld [vmem:[%s5613_s11 + $0x28] sm:$0xff] }
 0xe3c   : >> { %v2778_v58 = vmul.f32 0.35355338, %v2775_v53  ;;  %v3333_v53 = vld [vmem:[%s5613_s11 + $0x50] sm:$0xff] }
 0xe41   : >> { %v2941_v45 = vpop.f32.mrb[18].mxu1 }
 0xe42   : >> { %v4327_v46 = vpop.f32.mrb[19].mxu1  ;;  %v2942_v13 = vadd.f32 %v3894_v57, %v2941_v45  ;;  %v4588_v45 = vpack.c.bf16 %v3328_v44, %v3327_v43  ;;  %v3336_v57 = vld [vmem:[%s5613_s11 + $0x68] sm:$0xff] }
 0xe43   : >> { %v3329_v46 = vld [vmem:[%s5613_s11 + $0x30] sm:$0xff] }
 0xf05   : >> { %v2688_v47 = vpop.f32.mrb[18].mxu0 }
 0xf06   : >> { %v2692_v48 = vadd.f32 %v2688_v47, %v5513_v62  ;;  %v4294_v49 = vpop.f32.mrb[19].mxu0  ;;  %v3330_v47 = vld [vmem:[%s5613_s11 + $0x38] sm:$0xff] }
 0xf07   : >> { %v3331_v49 = vld [vmem:[%s5613_s11 + $0x40] sm:$0xff] }
 0xf0d   : >> { %v2858_v54 = vpop.f32.mrb[20].mxu0 }
 0xf0e   : >> { %v2859_v55 = vadd.f32 %v3884_v52, %v2858_v54  ;;  %v4316_v56 = vpop.f32.mrb[21].mxu0  ;;  %v4594_v52 = vpack.c.bf16 %v3332_v50, %v3331_v49  ;;  %v3334_v54 = vld [vmem:[%s5613_s11 + $0x58] sm:$0xff] }
 0xf0f   : >> { %v3335_v56 = vld [vmem:[%s5613_s11 + $0x60] sm:$0xff] }
 0xf10   : >> { %4329 = vmatpush3.xpose.msk.msra.mxu0 %vm1467_vm5, %v2859_v55  ;;  %v4597_v55 = vpack.c.bf16 %v3334_v54, %v3333_v53 }
 0xf11   : >> { %4333 = vmatprep.subr.mxu0 %v4789_v1 }
 0xf13   : >> { %4331 = vmatmul.mubr.msk.f32.vlgmr.msra.gmra.mrb[22].mxu0 %vm1467_vm5, %v2778_v58  ;;  %v4600_v58 = vpack.c.bf16 %v3336_v57, %v3335_v56 }
 0xf14   : >> { %4334 = vmatpush3.msk.msra.mxu0 %vm1560_vm6, %v2942_v13  ;;  %4335 = vmatprep.mubr.msk.f32.mxu0 %vm4788_vm3, %v4789_v1  ;;  %v3337_v13 = vld [vmem:[%s5613_s11 + $0x70] sm:$0xff] }
 0xf15   : >> { %4575 = vmatprep.subr.bf16.mxu0 %v4787_v61 }
 0xfe6   : >> { %v3017_v59 = vpop.f32.mrb[22].mxu0 }
 0xfe7   : >> { %v4332_v60 = vpop.f32.mrb[23].mxu0  ;;  %v3021_v62 = vsel %vm1544_vm7, %v3017_v59, -inf }
 0xfe8   : >> { %3022 = vmax.xlane.f32.xlu0 %v3021_v62  ;;  %v3908_v62 = vld [vmem:[%s3232_s7] ss:$0 sm:$0xff]  ;;  %s5687_s7 = scalar_lea.hbm (%p1175_p11), %s5813_s26, %s3915_s8 }
0x1075   : >> { %v3023_v63 = vpop.xlane.xlu0 %3022 }
0x1076   : >> { %v3024_v0 = vsub.f32 %v3017_v59, %v3023_v63  ;;  %v3338_v59 = vld [vmem:[%s5613_s11 + $0x78] sm:$0xff] }
0x1077   : >> { %v4603_v60 = vpack.c.bf16 %v3338_v59, %v3337_v13 }
0x1078   : >> { %v3025_v2 = vmul.f32 1.442695, %v3024_v0 }
0x107a   : >> { %4695 = vpow2.f32 %v3025_v2 }
0x1084   : >> { %v4696_v3 = vpop.eup %4695 }
0x1085   : >> { %v3027_v4 = vsel %vm1544_vm7, %v4696_v3, 0.0 }
0x1086   : >> { %3028 = vadd.xlane.f32.xlu1 %v3027_v4 }
0x1113   : >> { %v3029_v6 = vpop.xlane.xlu1 %3028 }
0x1114   : >> { %4697 = vrcp.f32 %v3029_v6 }
0x111e   : >> { %v4698_v7 = vpop.eup %4697 }
0x111f   : >> { %v3031_v8 = vmul.f32 %v4698_v7, %v4696_v3 }
0x1121   : >> { %4336 = vmatmul.mubr.msk.f32.vlgmr.msra.gmra.mrb[24].mxu0 %vm1556_vm8, %v3031_v8  ;;  %v3912_v8 = vld [vmem:[%s3339_s10] ss:$0 sm:$0xff]  ;;  %s4707_s10 = scalar_lea.vmem (%p1175_p11), %s5689_s28, 16 }
0x1122   : >> { %4351 = vmatprep.mubr.msk.f32.mxu0 %vm4788_vm3, %v4789_v1  ;;  %p4708_p12 = scmp.ne.s32.totalorder (%p1175_p11), %s5689_s28, %s4707_s10  ;;  %p4715_p2 = scmp.lt.s32.totalorder (%p1175_p11), %s4713_s6, %s4707_s10 }
0x1124   : > { %p4709_p13 = pnand (%p1175_p11), %p4708_p12, %p4972_p5  ;;  %p4716_p3 = por (%p1175_p11), %p4715_p2, %p4714_p1 }
0x1126   : > { %p4710_p0 = pneg (%p1175_p11), %p4709_p13 }
0x1128   : > { %p4717_p4 = pnand (%p1175_p11), %p4716_p3, %p4710_p0 }
0x11f4   : >> { %v3104_v9 = vpop.f32.mrb[24].mxu0 }
0x11f5   : >> { %v4337_v10 = vpop.f32.mrb[25].mxu0  ;;  %4341 = vmatmul.mubr.msk.f32.vlgmr.msra.gmra.mrb[20].mxu1 %vm1467_vm5, %v3104_v9 }
0x11f6   : >> { %4386 = vmatprep.mubr.msk.f32.mxu1 %vm4788_vm3, %v4789_v1  ;;  %4583 = vmatpush3.bf16.msra.mxu1 %v4582_v39 }
0x11f7   : >> { %4584 = vmatprep.subr.bf16.mxu1 %v4787_v61 }
0x11fa   : >> { %4586 = vmatpush3.bf16.msra.mxu1 %v4585_v42 }
0x11fb   : >> { %4587 = vmatprep.subr.bf16.mxu1 %v4787_v61 }
0x11fe   : >> { %4589 = vmatpush3.bf16.msra.mxu1 %v4588_v45 }
0x11ff   : >> { %4590 = vmatprep.subr.bf16.mxu1 %v4787_v61 }
0x12c8   : >> { %v3180_v11 = vpop.f32.mrb[20].mxu1 }
0x12c9   : >> { %v3184_v12 = vadd.f32 %v3180_v11, %v2692_v48  ;;  %v4342_v14 = vpop.f32.mrb[21].mxu1  ;;  %v4591_v48 = vpack.c.bf16 %v3330_v47, %v3329_v46 }
0x12cb   : >> { %v3185_v16 = vadd.f32 %v4781_v51, %v3184_v12  ;;  %v3228_v51 = vld [vmem:[%s3227_s2] sm:$0xff]  ;;  %4592 = vmatpush3.bf16.msra.mxu1 %v4591_v48  ;;  %s3592_s2 = scalar_lea.sflag (%p1175_p11), [#allocation4], %s5814_s29 }
0x12cc   : >> { %v4576_v24 = vpack.c.bf16 %v3229_v23, %v3228_v51  ;;  %4593 = vmatprep.subr.bf16.mxu1 %v4787_v61  ;;  %v3438_v23 = vld [vmem:[%s5756_s24 + $0x18] sm:$0xff] (%p1175_p11) }
0x12cd   : >> { %v5588_v17 = vadd.f32 %v3904_v15, %v3185_v16 }
0x12ce   : >> { %4577 = vmatpush3.bf16.msra.mxu0 %v4576_v24  ;;  %v4792_v24 = vmov (%p1175_p11), 0.0  }
0x12cf   : >> { %v3199_v18 = vsel %vm1144_vm2, %v5588_v17, 0.0  ;;  %4578 = vmatprep.subr.bf16.mxu0 %v4787_v61  ;;  %4595 = vmatpush3.bf16.msra.mxu1 %v4594_v52 }
0x12d0   : >> { %3200 = vadd.xlane.f32.xlu0 %v3199_v18  ;;  %4596 = vmatprep.subr.bf16.mxu1 %v4787_v61 }
0x12d2   : >> { %4580 = vmatpush3.bf16.msra.mxu0 %v4579_v27  ;;  %v3514_v27 = vld [vmem:[%s5757_s25 + $0x8] sm:$0xff] (%p1175_p11) }
0x12d3   : >> { %4598 = vmatpush3.bf16.msra.mxu1 %v4597_v55 }
0x12d4   : >> { %4599 = vmatprep.subr.bf16.mxu1 %v4787_v61 }
0x12d7   : >> { %4601 = vmatpush3.bf16.msra.mxu1 %v4600_v58 }
0x12d8   : >> { %4602 = vmatprep.subr.bf16.mxu1 %v4787_v61 }
0x12db   : >> { %4604 = vmatpush3.bf16.msra.mxu1 %v4603_v60 }
0x135d   : >> { %v3201_v19 = vpop.xlane.xlu0 %3200 }
0x135e   : >> { %v3202_v20 = vmul.f32 0.03125, %v3201_v19 }
0x1360   : >> { %v3203_v1 = vsub.f32 %v5588_v17, %v3202_v20 }
0x1362   : >> { %v3204_v21 = vmul.f32 %v3203_v1, %v3203_v1 }
0x1364   : >> { %v3205_v22 = vsel %vm1144_vm2, %v3204_v21, 0.0  ;;  %v3437_v21 = vld [vmem:[%s5756_s24 + $0x10] sm:$0xff] (%p1175_p11) }
0x1365   : >> { %3206 = vadd.xlane.f32.xlu1 %v3205_v22  ;;  %v4790_v22 = vmov (%p1175_p11), 0.0|0.0   ;;  %v4609_v25 = vpack.c.bf16 (%p1175_p11), %v3438_v23, %v3437_v21 }
0x1366   : > { %4605 = vmatprep.subr.bf16.mxu0 (%p1175_p11), %v4790_v22  ;;  %4611 = vmatprep.subr.bf16.mxu1 (%p1175_p11), %v4790_v22 }
0x13f2   : >> { %v3207_v28 = vpop.xlane.xlu1 %3206 }
0x13f3   : >> { %v3208_v29 = vmul.f32 0.03125, %v3207_v28  ;;  %v4612_v28 = vpack.c.bf16 (%p1175_p11), %v3514_v27, %v3513_v26 }
0x13f5   : >> { %v3209_v30 = vadd.f32 1e-05, %v3208_v29 }
0x13f7   : >> { %4699 = vrsqrt.f32 %v3209_v30 }
0x1401   : >> { %v4700_v31 = vpop.eup %4699 }
0x1402   : >> { %v3211_v33 = vmul.f32 %v4700_v31, %v3203_v1  ;;  %v3436_v1 = vld [vmem:[%s5756_s24 + $0x8] sm:$0xff] (%p1175_p11) }
0x1404   : >> { %v3218_v35 = vmul.f32 %v3905_v32, %v3211_v33  ;;  %v3418_v33 = vld [vmem:[%s5754_s22] sm:$0x1] (%p1175_p11) }
0x1406   : >> { %v3225_v36 = vadd.f32 %v3906_v34, %v3218_v35  ;;  %v3419_v35 = vld [vmem:[%s5755_s23] sm:$0x1] (%p1175_p11) }
0x1408   : >> { %4352 = vmatmul.mubr.msk.f32.vlgmr.msra.gmra.mrb[26].mxu0 %vm1226_vm4, %v3225_v36 }
0x1409   : > { %4397 = vmatprep.mubr.msk.f32.mxu0 (%p1175_p11), %vm4791_vm9, %v4792_v24 }
0x14db   : >> { %v3309_v63 = vpop.f32.mrb[26].mxu0 }
0x14dc   : >> { %v3310_v0 = vadd.f32 %v3908_v62, %v3309_v63  ;;  %v4353_v2 = vpop.f32.mrb[27].mxu0 }
0x14de   : >> { %v3910_v3 = vmul.f32 -1.702, %v3310_v0 }
0x14e0   : >> { %v3315_v4 = vmul.f32 1.442695, %v3910_v3 }
0x14e2   : >> { %4701 = vpow2.f32 %v3315_v4 }
0x14ec   : >> { %v4702_v5 = vpop.eup %4701 }
0x14ed   : >> { %v3317_v6 = vadd.f32 1.0, %v4702_v5 }
0x14ef   : >> { %4703 = vrcp.f32 %v3317_v6 }
0x14f9   : >> { %v4704_v61 = vpop.eup %4703 }
0x14fa   : >> { %v3320_v7 = vmul.f32 %v4704_v61, %v3310_v0 }
0x14fc   : >> { %4387 = vmatmul.mubr.f32.vlgmr.msra.gmra.mrb[22].mxu1 %v3320_v7 }
0x14fd   : > { %4404 = vmatprep.mubr.msk.f32.mxu1 (%p1175_p11), %vm4791_vm9, %v4792_v24  ;;  %4613 = vmatpush3.bf16.msra.mxu1 (%p1175_p11), %v4612_v28 }
0x15ce   : > { %1177 = sbr.rel (!%p1175_p11) target bundleno = 645 (0x285), region = 207 }
0x15cf   : >> { %v3413_v9 = vpop.f32.mrb[22].mxu1 }
0x15d0   : >> { %v3414_v10 = vadd.f32 %v3912_v8, %v3413_v9  ;;  %v4388_v11 = vpop.f32.mrb[23].mxu1 }
0x15d2   : >> { %v3417_v12 = vadd.f32 %v3414_v10, %v5588_v17   ;;  %v3435_v17 = vld [vmem:[%s5756_s24] sm:$0xff] (%p1175_p11) }
0x15d4   : >> { %v5809_v51 = vmov %v3417_v12  ;;  %v3420_v14 = vsel (%p1175_p11), %vm1135_vm0, %v3417_v12, 0.0 }
0x15d5   : > { %3421 = vadd.xlane.f32.xlu0 %v3420_v14  ;;  %v4606_v51 = vpack.c.bf16 %v3436_v1, %v3435_v17 }
0x15d7   : > { %4607 = vmatpush3.bf16.msra.mxu0 %v4606_v51 }
0x15d8   : > { %4608 = vmatprep.subr.bf16.mxu0 %v4790_v22 }
0x15db   : > { %4610 = vmatpush3.bf16.msra.mxu0 %v4609_v25 }
0x1662   : > { %v3422_v15 = vpop.xlane.xlu0 %3421 }
0x1663   : > { %v3423_v16 = vmul.f32 0.03125, %v3422_v15 }
0x1665   : > { %v3424_v18 = vsub.f32 %v3417_v12, %v3423_v16 }
0x1667   : > { %v3425_v19 = vmul.f32 %v3424_v18, %v3424_v18 }
0x1669   : > { %v3426_v20 = vsel %vm1135_vm0, %v3425_v19, 0.0 }
0x166a   : > { %3427 = vadd.xlane.f32.xlu0 %v3426_v20 }
0x16f7   : > { %v3428_v29 = vpop.xlane.xlu0 %3427 }
0x16f8   : > { %v3429_v30 = vmul.f32 0.03125, %v3428_v29 }
0x16fa   : > { %v3430_v31 = vadd.f32 1e-05, %v3429_v30 }
0x16fc   : > { %4705 = vrsqrt.f32 %v3430_v31 }
0x1706   : > { %v4706_v32 = vpop.eup %4705 }
0x1707   : > { %v3432_v34 = vmul.f32 %v4706_v32, %v3424_v18 }
0x1709   : > { %v3433_v36 = vmul.f32 %v3432_v34, %v3418_v33 }
0x170b   : > { %v3434_v37 = vadd.f32 %v3433_v36, %v3419_v35 }
0x170d   : > { %4398 = vmatmul.mubr.msk.f32.vlgmr.msra.gmra.mrb[0].mxu0 %vm1226_vm4, %v3434_v37 }
0x17e0   : > { %v3509_v38 = vpop.f32.mrb[0].mxu0 }
0x17e1   : > { %v4399_v39 = vpop.f32.mrb[1].mxu0  ;;  %4405 = vmatmul.mubr.msk.f32.vlgmr.msra.gmra.mrb[0].mxu1 %vm3516_vm10, %v3509_v38 }
0x18b4   : > { %v3586_v41 = vpop.f32.mrb[0].mxu1 }
0x18b5   : > { %v3587_v42 = vadd.f32 %v3586_v41, %v3515_v40  ;;  %v4406_v43 = vpop.f32.mrb[1].mxu1 }
0x18b7   : > { %3590 = vst [vmem:[%s5303_s0] sm:$0x1] %v3587_v42 }
0x18b8   : > { %4720 = shalt.err (!%p4717_p4)
}
0x18b9   : > { %s4721_s0 = scalar_lea.hbm %s5687_s7, 16  ;;  %s4725_s30 = scalar_lea.hbm %s5813_s26, 32 }
0x18ba   : > { %p4722_p7 = scmp.ne.s32.totalorder %s5687_s7, %s4721_s0  ;;  %p4726_p10 = scmp.lt.u32.totalorder %s5687_s7, %s5813_s26 }
0x18bb   : > { %p4727_p11 = scmp.lt.u32.totalorder %s4725_s30, %s4721_s0  ;;  %p4729_p13 = scmp.lt.u32.totalorder %s4721_s0, %s5687_s7 }
0x18bc   : > { %p4723_p8 = pnand %p4722_p7, %p4972_p5 }
0x18bd   : > { %p4728_p12 = por %p4727_p11, %p4726_p10 }
0x18be   : > { %p4724_p9 = pneg %p4723_p8 }
0x18bf   : > { %p4730_p0 = por %p4729_p13, %p4728_p12 }
0x18c1   : > { %p4731_p1 = pnand %p4730_p0, %p4724_p9 }
0x18c3   : > { %4734 = shalt.err (!%p4731_p1)
}
0x18c4   : > { %4615 = dma.vmem_to_hbm [thread:$0]  (%p4972_p5), %s5689_s28, 16, %s5687_s7, %s3592_s2  }
0x18c5 PF: > { %s5815_s5 = sld [smem:[#allocation9_spill]]  ;;  %s5816_s29 = sld [smem:[#allocation6_spill]] }
0x18cb   : > { %p4621_p2 = scmp.ge.s32.totalorder %s5815_s5, 2  ;;  %s3616_s9 = sand.u32 1, %s5816_s29  }
0x18cc   : > { %s3617_s1 = scalar_lea.sflag [#allocation4], %s3616_s9 }
0x18cd   : > { %p4618_p3 = pnand %p4621_p2, %p4976_p6 }
0x18cf   : > { %4760 = dma.done.wait (!%p4618_p3), %s3617_s1, 16  }
0x18d0   : > { %4762 = vsyncadd (!%p4618_p3), %s3617_s1, 4294967280  ;;  %s5818_s30 = sld [smem:[#allocation10_spill]]  ;;  %s5819_s7 = sld [smem:[#allocation7_spill]] }
0x18d1   : > { %s5820_s4 = sld [smem:[#allocation8_spill]]  ;;  %s5821_s8 = sld [smem:[#allocation11_spill]] }
0x18d6   : > { %p37_p4 = scmp.ge.s32.totalorder %s5818_s30, 4  }
0x18d8   :  { %39 = sbr.rel (!%p37_p4) target bundleno = 18 (0x12), region = 218 }
0x18df   :  { %3621 = vsyncpa [#allocation4], 1 }
0x18e0   :  { %3623 = vsyncpa [#allocation4 + $0x1], 1 }

</bundles_post_ra>
